<compile_context>
chip_gen: v7x
topology: tpu7x:2x2x1
jax: 0.10.0
libtpu: 0.0.40
codegen_flags: <defaults>
</compile_context>

<pallas_src>
import math
from functools import partial

import jax
import jax.numpy as jnp
from jax import lax
from jax.experimental import pallas as pl
from jax.experimental.pallas import tpu as pltpu

# ----------------------------- configuration --------------------------------
VOCAB = 100          # tiny vocab for the synthetic BERT
B = 2                # batch
S_FULL = 10          # sequence length including [CLS]/[SEP]
SIN = S_FULL - 2     # inner sequence length after [:, 1:-1, :]
H = 32               # hidden size (stand-in for 768)
NH = 2               # mini-BERT attention heads
DK = H // NH
FF = 4 * H           # FFN intermediate
E = 8                # label embedding dim (stand-in for 50)
A = 16               # att_hidden of the relation classifier (stand-in for 20)
T = 5                # len(tag2idx)
R = 4                # len(rel2idx) == relation_labels
RA = R * A           # 64

# packed parameter-vector slab: one (N_VEC_ROWS, VEC_W) f32 array, one DMA
VEC_W = 128
(ROW_GE, ROW_BE, ROW_G1, ROW_B1, ROW_G2, ROW_B2,
 ROW_BQKV, ROW_BO, ROW_BF1, ROW_BF2, ROW_BNER, ROW_BQK) = range(12)
N_VEC_ROWS = 12


# ----------------------------- small helpers --------------------------------
def _layer_norm(x, g, b, eps=1e-12):
    mu = jnp.mean(x, axis=-1, keepdims=True)
    var = jnp.mean((x - mu) ** 2, axis=-1, keepdims=True)
    return (x - mu) * lax.rsqrt(var + eps) * g + b


def _softmax_last(s):
    s = s - jnp.max(s, axis=-1, keepdims=True)
    p = jnp.exp(s)
    return p / jnp.sum(p, axis=-1, keepdims=True)


# ------------------------- fused BERT_TF forward kernel -----------------------
def _fused_kernel(train_flag,
                  x_ref, bias_ref, mask_ref, tag_ref, vec_ref,
                  wqkv_ref, wo_ref, w1_ref, w2_ref, wner_ref, lab_ref,
                  wqk_e_ref, wqk_l_ref,
                  ner_ref, rel_ref):
    def vrow(i, w):                     # static slice of the packed vector slab
        return vec_ref[i:i + 1, 0:w]    # (1, w)

    x = x_ref[...]                      # (S_FULL, H)
    bias = bias_ref[...]                # (1, S_FULL) additive attention bias

    # ---- mini-BERT encoder layer (stand-in for BertModel) -------------------
    x = _layer_norm(x, vrow(ROW_GE, H), vrow(ROW_BE, H))
    qkv = (jnp.dot(x, wqkv_ref[...], preferred_element_type=jnp.float32)
           + vrow(ROW_BQKV, 3 * H))                           # (S, 3H)
    scale = 1.0 / math.sqrt(DK)
    ctx = []
    for h in range(NH):                                       # NH=2, unrolled
        qh = qkv[:, h * DK:(h + 1) * DK]
        kh = qkv[:, H + h * DK:H + (h + 1) * DK]
        vh = qkv[:, 2 * H + h * DK:2 * H + (h + 1) * DK]
        # contract DK directly -- no materialized kh.T
        s = lax.dot_general(qh, kh, (((1,), (1,)), ((), ())),
                            preferred_element_type=jnp.float32) * scale + bias
        p = _softmax_last(s)
        ctx.append(jnp.dot(p, vh, preferred_element_type=jnp.float32))
    ctx = jnp.concatenate(ctx, axis=-1)                       # (S, H)
    attn = (jnp.dot(ctx, wo_ref[...], preferred_element_type=jnp.float32)
            + vrow(ROW_BO, H))
    x = _layer_norm(x + attn, vrow(ROW_G1, H), vrow(ROW_B1, H))
    hmid = jax.nn.gelu(jnp.dot(x, w1_ref[...], preferred_element_type=jnp.float32)
                       + vrow(ROW_BF1, FF))
    ffn = (jnp.dot(hmid, w2_ref[...], preferred_element_type=jnp.float32)
           + vrow(ROW_BF2, H))
    x = _layer_norm(x + ffn, vrow(ROW_G2, H), vrow(ROW_B2, H))

    # ---- [:, 1:-1, :] slice, dropout, NER linear (all VMEM-resident) --------
    e = x[1:S_FULL - 1, :] * mask_ref[...]                    # (SIN, H), mask in {0,2}
    ner = (jnp.dot(e, wner_ref[...], preferred_element_type=jnp.float32)
           + vrow(ROW_BNER, T))                               # (SIN, T)
    ner_ref[...] = ner

    # ---- label embedding as onehot @ table -----------------------------------
    lane = lax.broadcasted_iota(jnp.int32, (SIN, T), 1)
    if train_flag:
        idx = tag_ref[...]                                    # (SIN, 1) gold tags
    else:
        # TODO(synk): CRF Viterbi decode not implemented; argmax fallback.
        mx = jnp.max(ner, axis=-1, keepdims=True)
        idx = jnp.min(jnp.where(ner >= mx, lane, T), axis=-1, keepdims=True)
    onehot = (lane == idx).astype(jnp.float32)                # (SIN, T)
    le = jnp.dot(onehot, lab_ref[...], preferred_element_type=jnp.float32)  # (SIN, E)

    # ---- relation classifier: hx = [e, le]; q|k = hx @ [Wq|Wk] + [bq|bk] -----
    # concat avoided: hx @ W == e @ W[:H] + le @ W[H:]; Wq and Wk fused on lanes.
    qk = (jnp.dot(e, wqk_e_ref[...], preferred_element_type=jnp.float32)
          + jnp.dot(le, wqk_l_ref[...], preferred_element_type=jnp.float32)
          + vrow(ROW_BQK, 2 * RA))                            # (SIN, 128) = [q | k]
    rscale = 1.0 / math.sqrt(A)
    rel = []
    for r in range(R):                                        # R=4, unrolled
        qr = qk[:, r * A:(r + 1) * A]
        kr = qk[:, RA + r * A:RA + (r + 1) * A]
        rel.append(lax.dot_general(qr, kr, (((1,), (1,)), ((), ())),
                                   preferred_element_type=jnp.float32) * rscale)
    # single lane-dense store; (B, R, SIN, SIN) restored in the wrapper
    rel_ref[...] = jnp.concatenate(rel, axis=-1)              # (SIN, R*SIN)


# ----------------------------- parameter init --------------------------------
def init_params(key):
    ks = jax.random.split(key, 10)
    n = lambda k, shp: jax.random.normal(k, shp, jnp.float32) * 0.02
    ones = lambda shp: jnp.ones(shp, jnp.float32)
    zeros = lambda shp: jnp.zeros(shp, jnp.float32)
    label_emb = n(ks[6], (T, E)).at[0].set(0.0)               # nn.Embedding padding_idx=0
    return dict(
        word_emb=n(ks[4], (VOCAB, H)),
        pos_emb=n(ks[5], (S_FULL, H)),
        ln_e_g=ones((1, H)), ln_e_b=zeros((1, H)),            # embedding LN
        w_qkv=n(ks[0], (H, 3 * H)), b_qkv=zeros((1, 3 * H)),  # QKV proj
        w_o=n(ks[1], (H, H)), b_o=zeros((1, H)),              # attn out proj
        ln_1_g=ones((1, H)), ln_1_b=zeros((1, H)),            # post-attn LN
        w_f1=n(ks[2], (H, FF)), b_f1=zeros((1, FF)),          # FFN in
        w_f2=n(ks[3], (FF, H)), b_f2=zeros((1, H)),           # FFN out
        ln_2_g=ones((1, H)), ln_2_b=zeros((1, H)),            # post-FFN LN
        w_ner=n(ks[7], (H, T)), b_ner=zeros((1, T)),          # NER head
        label_emb=label_emb,
        wq_rel=n(ks[8], (H + E, RA)), bq_rel=zeros((1, RA)),  # rel attention
        wk_rel=n(ks[9], (H + E, RA)), bk_rel=zeros((1, RA)),
    )


# ----------------------------- full forward ----------------------------------
def bert_tf_forward(params, sentence, tag, dropout_key,
                    train_flag=True, training=True):
    Bx, S = sentence.shape
    assert S == S_FULL
    p = params
    input_mask = sentence != 0                                        # [B, S]

    # embedding lookup + attention mask bias (gathers stay in XLA glue)
    x = jnp.take(p['word_emb'], sentence, axis=0) + p['pos_emb'][None]
    attn_bias = jnp.where(input_mask, 0.0, -1e9).astype(jnp.float32)[:, None, :]

    # dropout(0.5) mask from a runtime key (inverted scaling by 2.0)
    if training:
        keep = jax.random.bernoulli(dropout_key, 0.5, (Bx, SIN, H))
        drop_mask = keep.astype(jnp.float32) * 2.0
    else:
        drop_mask = jnp.ones((Bx, SIN, H), jnp.float32)
    tag3 = tag.astype(jnp.int32).reshape(Bx, SIN, 1)

    # ---- pack the 13 tiny gamma/beta/bias vectors into one (12, 128) slab ----
    def row(v):
        v = jnp.ravel(v)
        return jnp.pad(v, (0, VEC_W - v.shape[0]))[None, :]
    vec = jnp.concatenate([
        row(p['ln_e_g']), row(p['ln_e_b']),
        row(p['ln_1_g']), row(p['ln_1_b']),
        row(p['ln_2_g']), row(p['ln_2_b']),
        row(p['b_qkv']), row(p['b_o']), row(p['b_f1']), row(p['b_f2']),
        row(p['b_ner']),
        row(jnp.concatenate([jnp.ravel(p['bq_rel']), jnp.ravel(p['bk_rel'])])),
    ], axis=0)                                                        # (12, 128)

    # fuse rel Wq|Wk along lanes; split embed / label-emb rows
    wqk = jnp.concatenate([p['wq_rel'], p['wk_rel']], axis=1)         # (H+E, 128)
    wqk_e, wqk_l = wqk[:H], wqk[H:]

    def batch_spec(shape):
        nd = len(shape)
        return pl.BlockSpec((None,) + shape, lambda b, _nd=nd: (b,) + (0,) * _nd)

    def const_spec(shape):
        nd = len(shape)
        return pl.BlockSpec(shape, lambda b, _nd=nd: (0,) * _nd)

    ner_out, rel_flat = pl.pallas_call(
        partial(_fused_kernel, train_flag),
        grid=(Bx,),
        in_specs=[
            batch_spec((S_FULL, H)),          # token+pos embeddings
            batch_spec((1, S_FULL)),          # attention bias
            batch_spec((SIN, H)),             # dropout mask
            batch_spec((SIN, 1)),             # gold tags
            const_spec((N_VEC_ROWS, VEC_W)),  # packed vector slab
            const_spec((H, 3 * H)),           # wqkv
            const_spec((H, H)),               # wo
            const_spec((H, FF)),              # w1
            const_spec((FF, H)),              # w2
            const_spec((H, T)),               # w_ner
            const_spec((T, E)),               # label embedding table
            const_spec((H, 2 * RA)),          # [Wq|Wk] embed rows
            const_spec((E, 2 * RA)),          # [Wq|Wk] label-emb rows
        ],
        out_specs=(
            batch_spec((SIN, T)),
            batch_spec((SIN, R * SIN)),
        ),
        out_shape=(
            jax.ShapeDtypeStruct((Bx, SIN, T), jnp.float32),
            jax.ShapeDtypeStruct((Bx, SIN, R * SIN), jnp.float32),
        ),
        compiler_params=pltpu.CompilerParams(dimension_semantics=("parallel",)),
    )(x, attn_bias, drop_mask, tag3, vec,
      p['w_qkv'], p['w_o'], p['w_f1'], p['w_f2'], p['w_ner'], p['label_emb'],
      wqk_e, wqk_l)

    rel_logits = rel_flat.reshape(Bx, SIN, R, SIN).transpose(0, 2, 1, 3)
    return ner_out, rel_logits


# ----------------------------------- main -------------------------------------
if __name__ == "__main__":
    key = jax.random.PRNGKey(0)
    pkey, skey, tkey, dkey = jax.random.split(key, 4)
    params = init_params(pkey)

    sentence = jax.random.randint(skey, (B, S_FULL), 1, VOCAB, dtype=jnp.int32)
    sentence = sentence.at[1, -2:].set(0)       # a bit of padding to exercise mask
    tag = jax.random.randint(tkey, (B, SIN), 0, T, dtype=jnp.int32)

    ner_out, rel_logits = bert_tf_forward(params, sentence, tag, dkey,
                                          train_flag=True, training=True)
    jax.block_until_ready((ner_out, rel_logits))

    assert ner_out.shape == (B, SIN, T), ner_out.shape
    assert rel_logits.shape == (B, R, SIN, SIN), rel_logits.shape
    assert bool(jnp.all(jnp.isfinite(ner_out))) and bool(jnp.all(jnp.isfinite(rel_logits)))
    print("KERNEL_OK")
</pallas_src>

<mosaic_0001>
module attributes {stable_mosaic.version = 11 : i64} {
  func.func @_fused_kernel(%arg0: i32, %arg1: memref<1x10x32xf32, #tpu.memory_space<vmem>>, %arg2: memref<1x1x10xf32, #tpu.memory_space<vmem>>, %arg3: memref<1x8x32xf32, #tpu.memory_space<vmem>>, %arg4: memref<1x8x1xi32, #tpu.memory_space<vmem>>, %arg5: memref<12x128xf32, #tpu.memory_space<vmem>>, %arg6: memref<32x96xf32, #tpu.memory_space<vmem>>, %arg7: memref<32x32xf32, #tpu.memory_space<vmem>>, %arg8: memref<32x128xf32, #tpu.memory_space<vmem>>, %arg9: memref<128x32xf32, #tpu.memory_space<vmem>>, %arg10: memref<32x5xf32, #tpu.memory_space<vmem>>, %arg11: memref<5x8xf32, #tpu.memory_space<vmem>>, %arg12: memref<32x128xf32, #tpu.memory_space<vmem>>, %arg13: memref<8x128xf32, #tpu.memory_space<vmem>>, %arg14: memref<1x8x5xf32, #tpu.memory_space<vmem>>, %arg15: memref<1x8x32xf32, #tpu.memory_space<vmem>>) attributes {dimension_semantics = [#tpu.dimension_semantics<parallel>], iteration_bounds = array<i64: 2>, scalar_prefetch = 0 : i64, scratch_operands = 0 : i64, tpu.core_type = #tpu.core_type<tc>, window_params = [{transform_indices = @transform_0, window_bounds = array<i64: 1, 10, 32>}, {transform_indices = @transform_1, window_bounds = array<i64: 1, 1, 10>}, {transform_indices = @transform_2, window_bounds = array<i64: 1, 8, 32>}, {transform_indices = @transform_3, window_bounds = array<i64: 1, 8, 1>}, {pipeline_mode = #tpu.pipeline_mode<synchronous>, transform_indices = @transform_4, window_bounds = array<i64: 12, 128>}, {pipeline_mode = #tpu.pipeline_mode<synchronous>, transform_indices = @transform_5, window_bounds = array<i64: 32, 96>}, {pipeline_mode = #tpu.pipeline_mode<synchronous>, transform_indices = @transform_6, window_bounds = array<i64: 32, 32>}, {pipeline_mode = #tpu.pipeline_mode<synchronous>, transform_indices = @transform_7, window_bounds = array<i64: 32, 128>}, {pipeline_mode = #tpu.pipeline_mode<synchronous>, transform_indices = @transform_8, window_bounds = array<i64: 128, 32>}, {pipeline_mode = #tpu.pipeline_mode<synchronous>, transform_indices = @transform_9, window_bounds = array<i64: 32, 5>}, {pipeline_mode = #tpu.pipeline_mode<synchronous>, transform_indices = @transform_10, window_bounds = array<i64: 5, 8>}, {pipeline_mode = #tpu.pipeline_mode<synchronous>, transform_indices = @transform_11, window_bounds = array<i64: 32, 128>}, {pipeline_mode = #tpu.pipeline_mode<synchronous>, transform_indices = @transform_12, window_bounds = array<i64: 8, 128>}, {transform_indices = @transform_13, window_bounds = array<i64: 1, 8, 5>}, {transform_indices = @transform_14, window_bounds = array<i64: 1, 8, 32>}]} {
    %c0 = arith.constant 0 : index
    %c0_0 = arith.constant 0 : index
    %c0_1 = arith.constant 0 : index
    %0 = vector.load %arg1[%c0, %c0_0, %c0_1] : memref<1x10x32xf32, #tpu.memory_space<vmem>>, vector<1x10x32xf32>
    %1 = vector.shape_cast %0 : vector<1x10x32xf32> to vector<10x32xf32>
    %c0_2 = arith.constant 0 : index
    %c0_3 = arith.constant 0 : index
    %c0_4 = arith.constant 0 : index
    %2 = vector.load %arg2[%c0_2, %c0_3, %c0_4] : memref<1x1x10xf32, #tpu.memory_space<vmem>>, vector<1x1x10xf32>
    %3 = vector.shape_cast %2 : vector<1x1x10xf32> to vector<1x10xf32>
    %c0_5 = arith.constant 0 : index
    %c0_6 = arith.constant 0 : index
    %4 = vector.load %arg5[%c0_5, %c0_6] : memref<12x128xf32, #tpu.memory_space<vmem>>, vector<1x32xf32>
    %c1 = arith.constant 1 : index
    %c0_7 = arith.constant 0 : index
    %5 = vector.load %arg5[%c1, %c0_7] : memref<12x128xf32, #tpu.memory_space<vmem>>, vector<1x32xf32>
    %cst = arith.constant dense<0.000000e+00> : vector<10xf32>
    %6 = vector.multi_reduction <add>, %1, %cst [1] : vector<10x32xf32> to vector<10xf32>
    %7 = vector.shape_cast %6 : vector<10xf32> to vector<10x1xf32>
    %cst_8 = arith.constant 3.200000e+01 : f32
    %8 = vector.broadcast %cst_8 : f32 to vector<10x1xf32>
    %9 = arith.divf %7, %8 : vector<10x1xf32>
    %10 = vector.broadcast %9 : vector<10x1xf32> to vector<10x32xf32>
    %11 = arith.subf %1, %10 : vector<10x32xf32>
    %12 = arith.mulf %11, %11 : vector<10x32xf32>
    %cst_9 = arith.constant dense<0.000000e+00> : vector<10xf32>
    %13 = vector.multi_reduction <add>, %12, %cst_9 [1] : vector<10x32xf32> to vector<10xf32>
    %14 = vector.shape_cast %13 : vector<10xf32> to vector<10x1xf32>
    %cst_10 = arith.constant 3.200000e+01 : f32
    %15 = vector.broadcast %cst_10 : f32 to vector<10x1xf32>
    %16 = arith.divf %14, %15 : vector<10x1xf32>
    %17 = vector.broadcast %9 : vector<10x1xf32> to vector<10x32xf32>
    %18 = arith.subf %1, %17 : vector<10x32xf32>
    %cst_11 = arith.constant 9.99999996E-13 : f32
    %19 = vector.broadcast %cst_11 : f32 to vector<10x1xf32>
    %20 = arith.addf %16, %19 : vector<10x1xf32>
    %21 = math.rsqrt %20 : vector<10x1xf32>
    %22 = vector.broadcast %21 : vector<10x1xf32> to vector<10x32xf32>
    %23 = arith.mulf %18, %22 : vector<10x32xf32>
    %24 = vector.broadcast %4 : vector<1x32xf32> to vector<10x32xf32>
    %25 = arith.mulf %23, %24 : vector<10x32xf32>
    %26 = vector.broadcast %5 : vector<1x32xf32> to vector<10x32xf32>
    %27 = arith.addf %25, %26 : vector<10x32xf32>
    %c0_12 = arith.constant 0 : index
    %c0_13 = arith.constant 0 : index
    %28 = vector.load %arg6[%c0_12, %c0_13] : memref<32x96xf32, #tpu.memory_space<vmem>>, vector<32x96xf32>
    %cst_14 = arith.constant dense<0.000000e+00> : vector<10x96xf32>
    %29 = tpu.matmul %27, %28, %cst_14 {dimension_numbers = #tpu.dot_dimension_numbers<[1], [0], [0], [1], [0, 0, 1, 1], [], []>} : vector<10x32xf32>, vector<32x96xf32>, vector<10x96xf32> -> vector<10x96xf32>
    %c6 = arith.constant 6 : index
    %c0_15 = arith.constant 0 : index
    %30 = vector.load %arg5[%c6, %c0_15] : memref<12x128xf32, #tpu.memory_space<vmem>>, vector<1x96xf32>
    %31 = vector.broadcast %30 : vector<1x96xf32> to vector<10x96xf32>
    %32 = arith.addf %29, %31 : vector<10x96xf32>
    %33 = vector.extract_strided_slice %32 {offsets = [0, 0], sizes = [10, 16], strides = [1, 1]} : vector<10x96xf32> to vector<10x16xf32>
    %34 = vector.extract_strided_slice %32 {offsets = [0, 32], sizes = [10, 16], strides = [1, 1]} : vector<10x96xf32> to vector<10x16xf32>
    %35 = vector.extract_strided_slice %32 {offsets = [0, 64], sizes = [10, 16], strides = [1, 1]} : vector<10x96xf32> to vector<10x16xf32>
    %cst_16 = arith.constant dense<0.000000e+00> : vector<10x10xf32>
    %36 = tpu.matmul %33, %34, %cst_16 {dimension_numbers = #tpu.dot_dimension_numbers<[1], [1], [0], [0], [0, 0, 1, 0], [], []>} : vector<10x16xf32>, vector<10x16xf32>, vector<10x10xf32> -> vector<10x10xf32>
    %cst_17 = arith.constant 2.500000e-01 : f32
    %37 = vector.broadcast %cst_17 : f32 to vector<10x10xf32>
    %38 = arith.mulf %36, %37 : vector<10x10xf32>
    %39 = vector.broadcast %3 : vector<1x10xf32> to vector<10x10xf32>
    %40 = arith.addf %38, %39 : vector<10x10xf32>
    %cst_18 = arith.constant dense<0xFF800000> : vector<10xf32>
    %41 = vector.multi_reduction <maximumf>, %40, %cst_18 [1] : vector<10x10xf32> to vector<10xf32>
    %42 = vector.shape_cast %41 : vector<10xf32> to vector<10x1xf32>
    %43 = vector.broadcast %42 : vector<10x1xf32> to vector<10x10xf32>
    %44 = arith.subf %40, %43 : vector<10x10xf32>
    %45 = math.exp %44 : vector<10x10xf32>
    %cst_19 = arith.constant dense<0.000000e+00> : vector<10xf32>
    %46 = vector.multi_reduction <add>, %45, %cst_19 [1] : vector<10x10xf32> to vector<10xf32>
    %47 = vector.shape_cast %46 : vector<10xf32> to vector<10x1xf32>
    %48 = vector.broadcast %47 : vector<10x1xf32> to vector<10x10xf32>
    %49 = arith.divf %45, %48 : vector<10x10xf32>
    %cst_20 = arith.constant dense<0.000000e+00> : vector<10x16xf32>
    %50 = tpu.matmul %49, %35, %cst_20 {dimension_numbers = #tpu.dot_dimension_numbers<[1], [0], [0], [1], [0, 0, 1, 1], [], []>} : vector<10x10xf32>, vector<10x16xf32>, vector<10x16xf32> -> vector<10x16xf32>
    %51 = vector.extract_strided_slice %32 {offsets = [0, 16], sizes = [10, 16], strides = [1, 1]} : vector<10x96xf32> to vector<10x16xf32>
    %52 = vector.extract_strided_slice %32 {offsets = [0, 48], sizes = [10, 16], strides = [1, 1]} : vector<10x96xf32> to vector<10x16xf32>
    %53 = vector.extract_strided_slice %32 {offsets = [0, 80], sizes = [10, 16], strides = [1, 1]} : vector<10x96xf32> to vector<10x16xf32>
    %cst_21 = arith.constant dense<0.000000e+00> : vector<10x10xf32>
    %54 = tpu.matmul %51, %52, %cst_21 {dimension_numbers = #tpu.dot_dimension_numbers<[1], [1], [0], [0], [0, 0, 1, 0], [], []>} : vector<10x16xf32>, vector<10x16xf32>, vector<10x10xf32> -> vector<10x10xf32>
    %cst_22 = arith.constant 2.500000e-01 : f32
    %55 = vector.broadcast %cst_22 : f32 to vector<10x10xf32>
    %56 = arith.mulf %54, %55 : vector<10x10xf32>
    %57 = vector.broadcast %3 : vector<1x10xf32> to vector<10x10xf32>
    %58 = arith.addf %56, %57 : vector<10x10xf32>
    %cst_23 = arith.constant dense<0xFF800000> : vector<10xf32>
    %59 = vector.multi_reduction <maximumf>, %58, %cst_23 [1] : vector<10x10xf32> to vector<10xf32>
    %60 = vector.shape_cast %59 : vector<10xf32> to vector<10x1xf32>
    %61 = vector.broadcast %60 : vector<10x1xf32> to vector<10x10xf32>
    %62 = arith.subf %58, %61 : vector<10x10xf32>
    %63 = math.exp %62 : vector<10x10xf32>
    %cst_24 = arith.constant dense<0.000000e+00> : vector<10xf32>
    %64 = vector.multi_reduction <add>, %63, %cst_24 [1] : vector<10x10xf32> to vector<10xf32>
    %65 = vector.shape_cast %64 : vector<10xf32> to vector<10x1xf32>
    %66 = vector.broadcast %65 : vector<10x1xf32> to vector<10x10xf32>
    %67 = arith.divf %63, %66 : vector<10x10xf32>
    %cst_25 = arith.constant dense<0.000000e+00> : vector<10x16xf32>
    %68 = tpu.matmul %67, %53, %cst_25 {dimension_numbers = #tpu.dot_dimension_numbers<[1], [0], [0], [1], [0, 0, 1, 1], [], []>} : vector<10x10xf32>, vector<10x16xf32>, vector<10x16xf32> -> vector<10x16xf32>
    %69 = tpu.concatenate %50, %68 in 1 : vector<10x16xf32>, vector<10x16xf32> -> vector<10x32xf32>
    %c0_26 = arith.constant 0 : index
    %c0_27 = arith.constant 0 : index
    %70 = vector.load %arg7[%c0_26, %c0_27] : memref<32x32xf32, #tpu.memory_space<vmem>>, vector<32x32xf32>
    %cst_28 = arith.constant dense<0.000000e+00> : vector<10x32xf32>
    %71 = tpu.matmul %69, %70, %cst_28 {dimension_numbers = #tpu.dot_dimension_numbers<[1], [0], [0], [1], [0, 0, 1, 1], [], []>} : vector<10x32xf32>, vector<32x32xf32>, vector<10x32xf32> -> vector<10x32xf32>
    %c7 = arith.constant 7 : index
    %c0_29 = arith.constant 0 : index
    %72 = vector.load %arg5[%c7, %c0_29] : memref<12x128xf32, #tpu.memory_space<vmem>>, vector<1x32xf32>
    %73 = vector.broadcast %72 : vector<1x32xf32> to vector<10x32xf32>
    %74 = arith.addf %71, %73 : vector<10x32xf32>
    %75 = arith.addf %27, %74 : vector<10x32xf32>
    %c2 = arith.constant 2 : index
    %c0_30 = arith.constant 0 : index
    %76 = vector.load %arg5[%c2, %c0_30] : memref<12x128xf32, #tpu.memory_space<vmem>>, vector<1x32xf32>
    %c3 = arith.constant 3 : index
    %c0_31 = arith.constant 0 : index
    %77 = vector.load %arg5[%c3, %c0_31] : memref<12x128xf32, #tpu.memory_space<vmem>>, vector<1x32xf32>
    %cst_32 = arith.constant dense<0.000000e+00> : vector<10xf32>
    %78 = vector.multi_reduction <add>, %75, %cst_32 [1] : vector<10x32xf32> to vector<10xf32>
    %79 = vector.shape_cast %78 : vector<10xf32> to vector<10x1xf32>
    %cst_33 = arith.constant 3.200000e+01 : f32
    %80 = vector.broadcast %cst_33 : f32 to vector<10x1xf32>
    %81 = arith.divf %79, %80 : vector<10x1xf32>
    %82 = vector.broadcast %81 : vector<10x1xf32> to vector<10x32xf32>
    %83 = arith.subf %75, %82 : vector<10x32xf32>
    %84 = arith.mulf %83, %83 : vector<10x32xf32>
    %cst_34 = arith.constant dense<0.000000e+00> : vector<10xf32>
    %85 = vector.multi_reduction <add>, %84, %cst_34 [1] : vector<10x32xf32> to vector<10xf32>
    %86 = vector.shape_cast %85 : vector<10xf32> to vector<10x1xf32>
    %cst_35 = arith.constant 3.200000e+01 : f32
    %87 = vector.broadcast %cst_35 : f32 to vector<10x1xf32>
    %88 = arith.divf %86, %87 : vector<10x1xf32>
    %89 = vector.broadcast %81 : vector<10x1xf32> to vector<10x32xf32>
    %90 = arith.subf %75, %89 : vector<10x32xf32>
    %cst_36 = arith.constant 9.99999996E-13 : f32
    %91 = vector.broadcast %cst_36 : f32 to vector<10x1xf32>
    %92 = arith.addf %88, %91 : vector<10x1xf32>
    %93 = math.rsqrt %92 : vector<10x1xf32>
    %94 = vector.broadcast %93 : vector<10x1xf32> to vector<10x32xf32>
    %95 = arith.mulf %90, %94 : vector<10x32xf32>
    %96 = vector.broadcast %76 : vector<1x32xf32> to vector<10x32xf32>
    %97 = arith.mulf %95, %96 : vector<10x32xf32>
    %98 = vector.broadcast %77 : vector<1x32xf32> to vector<10x32xf32>
    %99 = arith.addf %97, %98 : vector<10x32xf32>
    %c0_37 = arith.constant 0 : index
    %c0_38 = arith.constant 0 : index
    %100 = vector.load %arg8[%c0_37, %c0_38] : memref<32x128xf32, #tpu.memory_space<vmem>>, vector<32x128xf32>
    %cst_39 = arith.constant dense<0.000000e+00> : vector<10x128xf32>
    %101 = tpu.matmul %99, %100, %cst_39 {dimension_numbers = #tpu.dot_dimension_numbers<[1], [0], [0], [1], [0, 0, 1, 1], [], []>} : vector<10x32xf32>, vector<32x128xf32>, vector<10x128xf32> -> vector<10x128xf32>
    %c8 = arith.constant 8 : index
    %c0_40 = arith.constant 0 : index
    %102 = vector.load %arg5[%c8, %c0_40] : memref<12x128xf32, #tpu.memory_space<vmem>>, vector<1x128xf32>
    %103 = vector.broadcast %102 : vector<1x128xf32> to vector<10x128xf32>
    %104 = arith.addf %101, %103 : vector<10x128xf32>
    %105 = arith.mulf %104, %104 : vector<10x128xf32>
    %106 = arith.mulf %104, %105 : vector<10x128xf32>
    %cst_41 = arith.constant 4.471500e-02 : f32
    %107 = vector.broadcast %cst_41 : f32 to vector<10x128xf32>
    %108 = arith.mulf %107, %106 : vector<10x128xf32>
    %109 = arith.addf %104, %108 : vector<10x128xf32>
    %cst_42 = arith.constant 0.797884583 : f32
    %110 = vector.broadcast %cst_42 : f32 to vector<10x128xf32>
    %111 = arith.mulf %110, %109 : vector<10x128xf32>
    %112 = math.tanh %111 : vector<10x128xf32>
    %cst_43 = arith.constant 1.000000e+00 : f32
    %113 = vector.broadcast %cst_43 : f32 to vector<10x128xf32>
    %114 = arith.addf %113, %112 : vector<10x128xf32>
    %cst_44 = arith.constant 5.000000e-01 : f32
    %115 = vector.broadcast %cst_44 : f32 to vector<10x128xf32>
    %116 = arith.mulf %115, %114 : vector<10x128xf32>
    %117 = arith.mulf %104, %116 : vector<10x128xf32>
    %c0_45 = arith.constant 0 : index
    %c0_46 = arith.constant 0 : index
    %118 = vector.load %arg9[%c0_45, %c0_46] : memref<128x32xf32, #tpu.memory_space<vmem>>, vector<128x32xf32>
    %cst_47 = arith.constant dense<0.000000e+00> : vector<10x32xf32>
    %119 = tpu.matmul %117, %118, %cst_47 {dimension_numbers = #tpu.dot_dimension_numbers<[1], [0], [0], [1], [0, 0, 1, 1], [], []>} : vector<10x128xf32>, vector<128x32xf32>, vector<10x32xf32> -> vector<10x32xf32>
    %c9 = arith.constant 9 : index
    %c0_48 = arith.constant 0 : index
    %120 = vector.load %arg5[%c9, %c0_48] : memref<12x128xf32, #tpu.memory_space<vmem>>, vector<1x32xf32>
    %121 = vector.broadcast %120 : vector<1x32xf32> to vector<10x32xf32>
    %122 = arith.addf %119, %121 : vector<10x32xf32>
    %123 = arith.addf %99, %122 : vector<10x32xf32>
    %c4 = arith.constant 4 : index
    %c0_49 = arith.constant 0 : index
    %124 = vector.load %arg5[%c4, %c0_49] : memref<12x128xf32, #tpu.memory_space<vmem>>, vector<1x32xf32>
    %c5 = arith.constant 5 : index
    %c0_50 = arith.constant 0 : index
    %125 = vector.load %arg5[%c5, %c0_50] : memref<12x128xf32, #tpu.memory_space<vmem>>, vector<1x32xf32>
    %cst_51 = arith.constant dense<0.000000e+00> : vector<10xf32>
    %126 = vector.multi_reduction <add>, %123, %cst_51 [1] : vector<10x32xf32> to vector<10xf32>
    %127 = vector.shape_cast %126 : vector<10xf32> to vector<10x1xf32>
    %cst_52 = arith.constant 3.200000e+01 : f32
    %128 = vector.broadcast %cst_52 : f32 to vector<10x1xf32>
    %129 = arith.divf %127, %128 : vector<10x1xf32>
    %130 = vector.broadcast %129 : vector<10x1xf32> to vector<10x32xf32>
    %131 = arith.subf %123, %130 : vector<10x32xf32>
    %132 = arith.mulf %131, %131 : vector<10x32xf32>
    %cst_53 = arith.constant dense<0.000000e+00> : vector<10xf32>
    %133 = vector.multi_reduction <add>, %132, %cst_53 [1] : vector<10x32xf32> to vector<10xf32>
    %134 = vector.shape_cast %133 : vector<10xf32> to vector<10x1xf32>
    %cst_54 = arith.constant 3.200000e+01 : f32
    %135 = vector.broadcast %cst_54 : f32 to vector<10x1xf32>
    %136 = arith.divf %134, %135 : vector<10x1xf32>
    %137 = vector.broadcast %129 : vector<10x1xf32> to vector<10x32xf32>
    %138 = arith.subf %123, %137 : vector<10x32xf32>
    %cst_55 = arith.constant 9.99999996E-13 : f32
    %139 = vector.broadcast %cst_55 : f32 to vector<10x1xf32>
    %140 = arith.addf %136, %139 : vector<10x1xf32>
    %141 = math.rsqrt %140 : vector<10x1xf32>
    %142 = vector.broadcast %141 : vector<10x1xf32> to vector<10x32xf32>
    %143 = arith.mulf %138, %142 : vector<10x32xf32>
    %144 = vector.broadcast %124 : vector<1x32xf32> to vector<10x32xf32>
    %145 = arith.mulf %143, %144 : vector<10x32xf32>
    %146 = vector.broadcast %125 : vector<1x32xf32> to vector<10x32xf32>
    %147 = arith.addf %145, %146 : vector<10x32xf32>
    %148 = vector.extract_strided_slice %147 {offsets = [1, 0], sizes = [8, 32], strides = [1, 1]} : vector<10x32xf32> to vector<8x32xf32>
    %c0_56 = arith.constant 0 : index
    %c0_57 = arith.constant 0 : index
    %c0_58 = arith.constant 0 : index
    %149 = vector.load %arg3[%c0_56, %c0_57, %c0_58] : memref<1x8x32xf32, #tpu.memory_space<vmem>>, vector<1x8x32xf32>
    %150 = vector.shape_cast %149 : vector<1x8x32xf32> to vector<8x32xf32>
    %151 = arith.mulf %148, %150 : vector<8x32xf32>
    %c0_59 = arith.constant 0 : index
    %c0_60 = arith.constant 0 : index
    %152 = vector.load %arg10[%c0_59, %c0_60] : memref<32x5xf32, #tpu.memory_space<vmem>>, vector<32x5xf32>
    %cst_61 = arith.constant dense<0.000000e+00> : vector<8x5xf32>
    %153 = tpu.matmul %151, %152, %cst_61 {dimension_numbers = #tpu.dot_dimension_numbers<[1], [0], [0], [1], [0, 0, 1, 1], [], []>} : vector<8x32xf32>, vector<32x5xf32>, vector<8x5xf32> -> vector<8x5xf32>
    %c10 = arith.constant 10 : index
    %c0_62 = arith.constant 0 : index
    %154 = vector.load %arg5[%c10, %c0_62] : memref<12x128xf32, #tpu.memory_space<vmem>>, vector<1x5xf32>
    %155 = vector.broadcast %154 : vector<1x5xf32> to vector<8x5xf32>
    %156 = arith.addf %153, %155 : vector<8x5xf32>
    %c0_63 = arith.constant 0 : index
    %c0_64 = arith.constant 0 : index
    %c0_65 = arith.constant 0 : index
    %157 = vector.load %arg14[%c0_63, %c0_64, %c0_65] : memref<1x8x5xf32, #tpu.memory_space<vmem>>, vector<1x8x5xf32>
    %158 = vector.shape_cast %157 : vector<1x8x5xf32> to vector<8x5xf32>
    %159 = vector.shape_cast %156 : vector<8x5xf32> to vector<1x8x5xf32>
    tpu.vector_store %arg14[%c0_63, %c0_64, %c0_65], %159 {strides = array<i32>} : memref<1x8x5xf32, #tpu.memory_space<vmem>>, vector<1x8x5xf32>,
    %160 = tpu.iota {dimensions = array<i32: 1>} : vector<8x5xi32>
    %c0_66 = arith.constant 0 : index
    %c0_67 = arith.constant 0 : index
    %c0_68 = arith.constant 0 : index
    %161 = vector.load %arg4[%c0_66, %c0_67, %c0_68] : memref<1x8x1xi32, #tpu.memory_space<vmem>>, vector<1x8x1xi32>
    %162 = vector.shape_cast %161 : vector<1x8x1xi32> to vector<8x1xi32>
    %163 = vector.broadcast %162 : vector<8x1xi32> to vector<8x5xi32>
    %164 = arith.cmpi eq, %160, %163 : vector<8x5xi32>
    %165 = arith.extui %164 : vector<8x5xi1> to vector<8x5xi32>
    %166 = arith.sitofp %165 : vector<8x5xi32> to vector<8x5xf32>
    %c0_69 = arith.constant 0 : index
    %c0_70 = arith.constant 0 : index
    %167 = vector.load %arg11[%c0_69, %c0_70] : memref<5x8xf32, #tpu.memory_space<vmem>>, vector<5x8xf32>
    %cst_71 = arith.constant dense<0.000000e+00> : vector<8x8xf32>
    %168 = tpu.matmul %166, %167, %cst_71 {dimension_numbers = #tpu.dot_dimension_numbers<[1], [0], [0], [1], [0, 0, 1, 1], [], []>} : vector<8x5xf32>, vector<5x8xf32>, vector<8x8xf32> -> vector<8x8xf32>
    %c0_72 = arith.constant 0 : index
    %c0_73 = arith.constant 0 : index
    %169 = vector.load %arg12[%c0_72, %c0_73] : memref<32x128xf32, #tpu.memory_space<vmem>>, vector<32x128xf32>
    %cst_74 = arith.constant dense<0.000000e+00> : vector<8x128xf32>
    %170 = tpu.matmul %151, %169, %cst_74 {dimension_numbers = #tpu.dot_dimension_numbers<[1], [0], [0], [1], [0, 0, 1, 1], [], []>} : vector<8x32xf32>, vector<32x128xf32>, vector<8x128xf32> -> vector<8x128xf32>
    %c0_75 = arith.constant 0 : index
    %c0_76 = arith.constant 0 : index
    %171 = vector.load %arg13[%c0_75, %c0_76] : memref<8x128xf32, #tpu.memory_space<vmem>>, vector<8x128xf32>
    %cst_77 = arith.constant dense<0.000000e+00> : vector<8x128xf32>
    %172 = tpu.matmul %168, %171, %cst_77 {dimension_numbers = #tpu.dot_dimension_numbers<[1], [0], [0], [1], [0, 0, 1, 1], [], []>} : vector<8x8xf32>, vector<8x128xf32>, vector<8x128xf32> -> vector<8x128xf32>
    %173 = arith.addf %170, %172 : vector<8x128xf32>
    %c11 = arith.constant 11 : index
    %c0_78 = arith.constant 0 : index
    %174 = vector.load %arg5[%c11, %c0_78] : memref<12x128xf32, #tpu.memory_space<vmem>>, vector<1x128xf32>
    %175 = vector.broadcast %174 : vector<1x128xf32> to vector<8x128xf32>
    %176 = arith.addf %173, %175 : vector<8x128xf32>
    %177 = vector.extract_strided_slice %176 {offsets = [0, 0], sizes = [8, 16], strides = [1, 1]} : vector<8x128xf32> to vector<8x16xf32>
    %178 = vector.extract_strided_slice %176 {offsets = [0, 64], sizes = [8, 16], strides = [1, 1]} : vector<8x128xf32> to vector<8x16xf32>
    %cst_79 = arith.constant dense<0.000000e+00> : vector<8x8xf32>
    %179 = tpu.matmul %177, %178, %cst_79 {dimension_numbers = #tpu.dot_dimension_numbers<[1], [1], [0], [0], [0, 0, 1, 0], [], []>} : vector<8x16xf32>, vector<8x16xf32>, vector<8x8xf32> -> vector<8x8xf32>
    %cst_80 = arith.constant 2.500000e-01 : f32
    %180 = vector.broadcast %cst_80 : f32 to vector<8x8xf32>
    %181 = arith.mulf %179, %180 : vector<8x8xf32>
    %182 = vector.extract_strided_slice %176 {offsets = [0, 16], sizes = [8, 16], strides = [1, 1]} : vector<8x128xf32> to vector<8x16xf32>
    %183 = vector.extract_strided_slice %176 {offsets = [0, 80], sizes = [8, 16], strides = [1, 1]} : vector<8x128xf32> to vector<8x16xf32>
    %cst_81 = arith.constant dense<0.000000e+00> : vector<8x8xf32>
    %184 = tpu.matmul %182, %183, %cst_81 {dimension_numbers = #tpu.dot_dimension_numbers<[1], [1], [0], [0], [0, 0, 1, 0], [], []>} : vector<8x16xf32>, vector<8x16xf32>, vector<8x8xf32> -> vector<8x8xf32>
    %cst_82 = arith.constant 2.500000e-01 : f32
    %185 = vector.broadcast %cst_82 : f32 to vector<8x8xf32>
    %186 = arith.mulf %184, %185 : vector<8x8xf32>
    %187 = vector.extract_strided_slice %176 {offsets = [0, 32], sizes = [8, 16], strides = [1, 1]} : vector<8x128xf32> to vector<8x16xf32>
    %188 = vector.extract_strided_slice %176 {offsets = [0, 96], sizes = [8, 16], strides = [1, 1]} : vector<8x128xf32> to vector<8x16xf32>
    %cst_83 = arith.constant dense<0.000000e+00> : vector<8x8xf32>
    %189 = tpu.matmul %187, %188, %cst_83 {dimension_numbers = #tpu.dot_dimension_numbers<[1], [1], [0], [0], [0, 0, 1, 0], [], []>} : vector<8x16xf32>, vector<8x16xf32>, vector<8x8xf32> -> vector<8x8xf32>
    %cst_84 = arith.constant 2.500000e-01 : f32
    %190 = vector.broadcast %cst_84 : f32 to vector<8x8xf32>
    %191 = arith.mulf %189, %190 : vector<8x8xf32>
    %192 = vector.extract_strided_slice %176 {offsets = [0, 48], sizes = [8, 16], strides = [1, 1]} : vector<8x128xf32> to vector<8x16xf32>
    %193 = vector.extract_strided_slice %176 {offsets = [0, 112], sizes = [8, 16], strides = [1, 1]} : vector<8x128xf32> to vector<8x16xf32>
    %cst_85 = arith.constant dense<0.000000e+00> : vector<8x8xf32>
    %194 = tpu.matmul %192, %193, %cst_85 {dimension_numbers = #tpu.dot_dimension_numbers<[1], [1], [0], [0], [0, 0, 1, 0], [], []>} : vector<8x16xf32>, vector<8x16xf32>, vector<8x8xf32> -> vector<8x8xf32>
    %cst_86 = arith.constant 2.500000e-01 : f32
    %195 = vector.broadcast %cst_86 : f32 to vector<8x8xf32>
    %196 = arith.mulf %194, %195 : vector<8x8xf32>
    %197 = tpu.concatenate %181, %186, %191, %196 in 1 : vector<8x8xf32>, vector<8x8xf32>, vector<8x8xf32>, vector<8x8xf32> -> vector<8x32xf32>
    %c0_87 = arith.constant 0 : index
    %c0_88 = arith.constant 0 : index
    %c0_89 = arith.constant 0 : index
    %198 = vector.load %arg15[%c0_87, %c0_88, %c0_89] : memref<1x8x32xf32, #tpu.memory_space<vmem>>, vector<1x8x32xf32>
    %199 = vector.shape_cast %198 : vector<1x8x32xf32> to vector<8x32xf32>
    %200 = vector.shape_cast %197 : vector<8x32xf32> to vector<1x8x32xf32>
    tpu.vector_store %arg15[%c0_87, %c0_88, %c0_89], %200 {strides = array<i32>} : memref<1x8x32xf32, #tpu.memory_space<vmem>>, vector<1x8x32xf32>,
    return
  }
  func.func @transform_0(%arg0: i32) -> (i32, i32, i32) {
    %c0_i32 = arith.constant 0 : i32
    %c0_i32_0 = arith.constant 0 : i32
    %c0_i32_1 = arith.constant 0 : i32
    return %arg0, %c0_i32, %c0_i32_0 : i32, i32, i32
  }
  func.func @transform_1(%arg0: i32) -> (i32, i32, i32) {
    %c0_i32 = arith.constant 0 : i32
    %c0_i32_0 = arith.constant 0 : i32
    %c0_i32_1 = arith.constant 0 : i32
    return %arg0, %c0_i32, %c0_i32_0 : i32, i32, i32
  }
  func.func @transform_2(%arg0: i32) -> (i32, i32, i32) {
    %c0_i32 = arith.constant 0 : i32
    %c0_i32_0 = arith.constant 0 : i32
    %c0_i32_1 = arith.constant 0 : i32
    return %arg0, %c0_i32, %c0_i32_0 : i32, i32, i32
  }
  func.func @transform_3(%arg0: i32) -> (i32, i32, i32) {
    %c0_i32 = arith.constant 0 : i32
    %c0_i32_0 = arith.constant 0 : i32
    %c0_i32_1 = arith.constant 0 : i32
    return %arg0, %c0_i32, %c0_i32_0 : i32, i32, i32
  }
  func.func @transform_4(%arg0: i32) -> (i32, i32) {
    %c0_i32 = arith.constant 0 : i32
    %c0_i32_0 = arith.constant 0 : i32
    %c0_i32_1 = arith.constant 0 : i32
    return %c0_i32, %c0_i32_0 : i32, i32
  }
  func.func @transform_5(%arg0: i32) -> (i32, i32) {
    %c0_i32 = arith.constant 0 : i32
    %c0_i32_0 = arith.constant 0 : i32
    %c0_i32_1 = arith.constant 0 : i32
    return %c0_i32, %c0_i32_0 : i32, i32
  }
  func.func @transform_6(%arg0: i32) -> (i32, i32) {
    %c0_i32 = arith.constant 0 : i32
    %c0_i32_0 = arith.constant 0 : i32
    %c0_i32_1 = arith.constant 0 : i32
    return %c0_i32, %c0_i32_0 : i32, i32
  }
  func.func @transform_7(%arg0: i32) -> (i32, i32) {
    %c0_i32 = arith.constant 0 : i32
    %c0_i32_0 = arith.constant 0 : i32
    %c0_i32_1 = arith.constant 0 : i32
    return %c0_i32, %c0_i32_0 : i32, i32
  }
  func.func @transform_8(%arg0: i32) -> (i32, i32) {
    %c0_i32 = arith.constant 0 : i32
    %c0_i32_0 = arith.constant 0 : i32
    %c0_i32_1 = arith.constant 0 : i32
    return %c0_i32, %c0_i32_0 : i32, i32
  }
  func.func @transform_9(%arg0: i32) -> (i32, i32) {
    %c0_i32 = arith.constant 0 : i32
    %c0_i32_0 = arith.constant 0 : i32
    %c0_i32_1 = arith.constant 0 : i32
    return %c0_i32, %c0_i32_0 : i32, i32
  }
  func.func @transform_10(%arg0: i32) -> (i32, i32) {
    %c0_i32 = arith.constant 0 : i32
    %c0_i32_0 = arith.constant 0 : i32
    %c0_i32_1 = arith.constant 0 : i32
    return %c0_i32, %c0_i32_0 : i32, i32
  }
  func.func @transform_11(%arg0: i32) -> (i32, i32) {
    %c0_i32 = arith.constant 0 : i32
    %c0_i32_0 = arith.constant 0 : i32
    %c0_i32_1 = arith.constant 0 : i32
    return %c0_i32, %c0_i32_0 : i32, i32
  }
  func.func @transform_12(%arg0: i32) -> (i32, i32) {
    %c0_i32 = arith.constant 0 : i32
    %c0_i32_0 = arith.constant 0 : i32
    %c0_i32_1 = arith.constant 0 : i32
    return %c0_i32, %c0_i32_0 : i32, i32
  }
  func.func @transform_13(%arg0: i32) -> (i32, i32, i32) {
    %c0_i32 = arith.constant 0 : i32
    %c0_i32_0 = arith.constant 0 : i32
    %c0_i32_1 = arith.constant 0 : i32
    return %arg0, %c0_i32, %c0_i32_0 : i32, i32, i32
  }
  func.func @transform_14(%arg0: i32) -> (i32, i32, i32) {
    %c0_i32 = arith.constant 0 : i32
    %c0_i32_0 = arith.constant 0 : i32
    %c0_i32_1 = arith.constant 0 : i32
    return %arg0, %c0_i32, %c0_i32_0 : i32, i32, i32
  }
}

</mosaic_0001>

<bundles_post_ra>
// kernel: tpu_custom_call.1
= control target key start
LH: loop header
LB: loop body
LE: loop exit
PB: predicated region body
PF: predicated region fallthrough
CT: control target
= control target key end

     0   :  { %s3299_s0 = inlined_call_operand.vmem [shape: f32[2,10,32], index: 0, kind: input, shape index: {}]   ;;  %s3300_s1 = inlined_call_operand.vmem [shape: f32[2,1,10], index: 1, kind: input, shape index: {}]   ;;  %s3301_s2 = inlined_call_operand.vmem [shape: f32[2,8,32], index: 2, kind: input, shape index: {}]   ;;  %s3302_s3 = inlined_call_operand.vmem [shape: s32[2,8,1], index: 3, kind: input, shape index: {}]   ;;  %s3303_s4 = inlined_call_operand.vmem [shape: f32[12,128], index: 4, kind: input, shape index: {}]   ;;  %s3304_s5 = inlined_call_operand.vmem [shape: f32[32,96], index: 5, kind: input, shape index: {}]   ;;  %s3305_s6 = inlined_call_operand.vmem [shape: f32[32,32], index: 6, kind: input, shape index: {}]   ;;  %s3306_s7 = inlined_call_operand.vmem [shape: f32[32,128], index: 7, kind: input, shape index: {}]   ;;  %s3307_s8 = inlined_call_operand.vmem [shape: f32[128,32], index: 8, kind: input, shape index: {}]   ;;  %s3308_s9 = inlined_call_operand.vmem [shape: f32[32,5], index: 9, kind: input, shape index: {}]   ;;  %s3309_s10 = inlined_call_operand.vmem [shape: f32[5,8], index: 10, kind: input, shape index: {}]   ;;  %s3310_s11 = inlined_call_operand.vmem [shape: f32[32,128], index: 11, kind: input, shape index: {}]   ;;  %s3311_s12 = inlined_call_operand.vmem [shape: f32[8,128], index: 12, kind: input, shape index: {}]   ;;  %s3312_s13 = inlined_call_operand.vmem [shape: f32[2,8,5], index: 13, kind: output, shape index: {0}]   ;;  %s3313_s14 = inlined_call_operand.hbm [shape: f32[2,8,32], index: 14, kind: output, shape index: {1}]  }
   0x1   :  { %3321 = sst [smem:[#allocation6_spill]] %s3299_s0 }
   0x2   :  { %3322 = sst [smem:[#allocation7_spill]] %s3300_s1 }
   0x3   :  { %3323 = sst [smem:[#allocation8_spill]] %s3304_s5 }
   0x4   :  { %3324 = sst [smem:[#allocation9_spill]] %s3305_s6 }
   0x5   :  { %20 = vsyncpa [#allocation3], 0 }
   0x6   :  { %22 = vsyncpa [#allocation3 + $0x1], 0  ;;  %s2909_s29 = smov 0   ;;  %s2911_s30 = smov 0  }
   0x7   :  { %s2913_s15 = smov 0   ;;  %s2915_s16 = smov 0  }
   0x8 LB: > { %s2930_s17 = sadd.s32 4294967295, %s2817_s16   ;;  %s2273_s18 = sadd.s32 4294967294, %s2817_s16   ;;  %s2817_s16 = sphi %s2915_s16, %s3342_s16   ;;  %s2813_s15 = sphi %s2913_s15, %s3341_s15   ;;  %s2809_s30 = sphi %s2911_s30, %s3340_s30   ;;  %s2805_s29 = sphi %s2909_s29, %s3339_s29  }
   0x9   : > { %s2934_s19 = sadd.s32 1, %s2817_s16   ;;  %s354_s20 = sadd.s32 1, %s2813_s15 }
   0xa   : > { %s351_s21 = ssub.s32 %s2817_s16, %s2934_s19  ;;  %p364_p0 = scmp.ne.s32.totalorder %s2813_s15, %s2809_s30 }
   0xb   : > { %p352_p1 = scmp.eq.s32.totalorder %s351_s21, 0  ;;  %p365_p2 = scmp.eq.s32.totalorder %s2930_s17, 1 }
   0xc   : > { %p370_p3 = scmp.ne.s32.totalorder %s2809_s30, %s2805_s29  ;;  %p371_p4 = scmp.eq.s32.totalorder %s2273_s18, 1 }
   0xd   : > { %s2945_s22 = scalar_select %p352_p1, %s2813_s15, %s354_s20  }
   0xe   : > { %p2947_p5 = por %p365_p2, %p364_p0  ;;  %p2951_p6 = por %p371_p4, %p370_p3 }
   0xf   : > { %3325 = sst [smem:[#allocation5_spill]] %s2945_s22  ;;  %p2276_p7 = scmp.ge.s32.totalorder %s2817_s16, 1 }
  0x10   : > { %p444_p8 = scmp.lt.s32.totalorder %s2817_s16, 3 }
  0x12   : > { %p445_p9 = pnand %p2276_p7, %p444_p8 }
  0x13   : > { %p505_p10 = scmp.lt.s32.totalorder (!%p445_p9), %s2930_s17, 1  ;;  %vm530_vm0 = vcmask (!%p445_p9), 261120   ;;  %s3328_s0 = sld [smem:[#allocation6_spill]] (!%p445_p9)  ;;  %vm534_vm1 = vcmask (!%p445_p9), 254976   ;;  %v2283_v27 = vld [vmem:[%s3303_s4] ss:$0 sm:$0xff] (!%p445_p9) }
  0x14   : > { %448 = sbr.rel (%p445_p9) target bundleno = 3804 (0xedc), region = 72  ;;  %s3329_s5 = sld [smem:[#allocation8_spill]] (!%p445_p9)  ;;  %v2284_v29 = vld [vmem:[%s3303_s4 + $0x1] ss:$0 sm:$0xff] (!%p445_p9)  ;;  %v2285_v36 = vld [vmem:[%s3303_s4 + $0x6] ss:$0 sm:$0xff] (!%p445_p9) }
  0x15   : > { %vm667_vm2 = vcmask (!%p445_p9), 130048   ;;  %s3314_s28 = smov (!%p445_p9), 80   ;;  %s3316_s20 = smov (!%p445_p9), 112   ;;  %vm765_vm4 = vcmask (!%p445_p9), 74752   ;;  %vm761_vm5 = vcmask (!%p445_p9), 80896   ;;  %vm796_vm6 = vcmask (!%p445_p9), 1041408  }
  0x16   : > { %vm2566_vm3 = vmpackc.low (!%p445_p9), %vm667_vm2, %vm667_vm2  ;;  %s3330_s1 = sld [smem:[#allocation7_spill]] (!%p445_p9)  ;;  %s3318_s27 = smov (!%p445_p9), 64   ;;  %vm2824_vm7 = vmmov (!%p445_p9), 1   ;;  %vm2828_vm9 = vmmov (!%p445_p9), 0   ;;  %vm1484_vm10 = vcmask (!%p445_p9), 1046528   ;;  %vm1575_vm11 = vcmask (!%p445_p9), 1044480  }
  0x17   : > { %vm2572_vm8 = vmpackc.low (!%p445_p9), %vm796_vm6, %vm2824_vm7  ;;  %s3331_s6 = sld [smem:[#allocation9_spill]] (!%p445_p9)  ;;  %vm1560_vm13 = vcmask (!%p445_p9), 39936   ;;  %vm1654_vm14 = vcmask (!%p445_p9), 64512   ;;  %vm2133_vm15 = vcmask (!%p445_p9), 195584  }
  0x1a   : > { %v571_v14 = vld [vmem:[%s3329_s5] sm:$0xff] (!%p445_p9)  ;;  %v572_v15 = vld [vmem:[%s3329_s5 + $0x8] sm:$0xff] (!%p445_p9)  ;;  %v573_v16 = vld [vmem:[%s3329_s5 + $0x10] sm:$0xff] (!%p445_p9) }
  0x1b   : > { %s2959_s25 = scalar_select %p505_p10, %s2930_s17, 1  ;;  %v2557_v17 = vpack.c.bf16 %v572_v15, %v571_v14  ;;  %v574_v18 = vld [vmem:[%s3329_s5 + $0x18] sm:$0xff] }
  0x1c   : > { %v2561_v19 = vpack.c.bf16 %v574_v18, %v573_v16 }
  0x1d   : > { %s2334_s26 = sshll.u32 %s2959_s25, 4  ;;  %2558 = vmatprep.subr.bf16.mxu0 %v2557_v17  ;;  %s512_s22 = scalar_lea.vmem %s3330_s1, %s2959_s25 }
  0x1e   : > { %s509_s18 = scalar_lea.vmem %s3328_s0, %s2334_s26  ;;  %2560 = vmatpush3.bf16.msra.mxu0 %v2557_v17  ;;  %v2292_v53 = vld [vmem:[%s512_s22] ss:$0 sm:$0xff]  ;;  %s3317_s26 = smov 48  }
  0x1f   : > { %v525_v0 = vld [vmem:[%s509_s18] sm:$0xff]  ;;  %v526_v1 = vld [vmem:[%s509_s18 + $0x8] sm:$0x3]  ;;  %2562 = vmatprep.subr.bf16.mxu0 %v2561_v19  ;;  %s3315_s18 = smov 96   ;;  %s3146_s0 = sshll.u32 %s2959_s25, 3 }
  0x20   : > { %v531_v2 = vsel %vm530_vm0, %v525_v0, 0.0  ;;  %v535_v3 = vsel %vm534_vm1, %v526_v1, 0.0  ;;  %s520_s5 = scalar_lea.vmem %s3302_s3, %s3146_s0  ;;  %s516_s1 = scalar_lea.vmem %s3301_s2, %s3146_s0 }
  0x21   : > { %532 = vadd.xlane.f32.xlu0 %v531_v2  ;;  %s524_s21 = scalar_lea.vmem %s3312_s13, %s3146_s0  ;;  %s2831_s25 = smov 8  }
  0x22   : > { %2564 = vmatpush3.bf16.msra.mxu0 %v2561_v19  ;;  %s502_s22 = sand.u32 1, %s2809_s30  }
  0x23   : > { %s2277_s0 = sshll.u32 %s502_s22, 3 }
  0x25   : > { %536 = vadd.xlane.f32.xlu0 %v535_v3 }
  0xae   : > { %v533_v4 = vpop.xlane.xlu0 %532 }
  0xaf   : > { %v539_v5 = vmul.f32 0.03125, %v533_v4 }
  0xb1   : > { %v541_v6 = vsub.f32 %v525_v0, %v539_v5 }
  0xb2   : > { %v537_v7 = vpop.xlane.xlu0 %536 }
  0xb3   : > { %v540_v8 = vmul.f32 0.03125, %v537_v7  ;;  %v543_v9 = vmul.f32 %v541_v6, %v541_v6 }
  0xb5   : > { %v542_v10 = vsub.f32 %v526_v1, %v540_v8  ;;  %v545_v11 = vsel %vm530_vm0, %v543_v9, 0.0 }
  0xb6   : > { %546 = vadd.xlane.f32.xlu1 %v545_v11 }
  0xb7   : > { %v544_v12 = vmul.f32 %v542_v10, %v542_v10 }
  0xb9   : > { %v548_v13 = vsel %vm534_vm1, %v544_v12, 0.0 }
  0xba   : > { %549 = vadd.xlane.f32.xlu1 %v548_v13 }
 0x143   : > { %v547_v20 = vpop.xlane.xlu1 %546 }
 0x144   : > { %v551_v21 = vmul.f32 0.03125, %v547_v20 }
 0x146   : > { %v553_v22 = vadd.f32 1e-12, %v551_v21 }
 0x147   : > { %v550_v23 = vpop.xlane.xlu1 %549 }
 0x148   : > { %2723 = vrsqrt.f32 %v553_v22  ;;  %v552_v24 = vmul.f32 0.03125, %v550_v23 }
 0x14a   : > { %v554_v25 = vadd.f32 1e-12, %v552_v24 }
 0x14c   : > { %2725 = vrsqrt.f32 %v554_v25 }
 0x152   : > { %v2724_v26 = vpop.eup %2723 }
 0x153   : > { %v557_v28 = vmul.f32 %v2724_v26, %v541_v6 }
 0x155   : > { %v563_v30 = vmul.f32 %v2283_v27, %v557_v28 }
 0x156   : > { %v2726_v31 = vpop.eup %2725 }
 0x157   : > { %v558_v32 = vmul.f32 %v2726_v31, %v542_v10  ;;  %v2987_v33 = vadd.f32 %v2284_v29, %v563_v30 }
 0x159   : > { %v564_v34 = vmul.f32 %v2283_v27, %v558_v32  ;;  %2417 = vmatprep.mubr.msk.f32.mxu0 %vm530_vm0, %v2987_v33 }
 0x15b   : > { %v2991_v35 = vadd.f32 %v2284_v29, %v564_v34 }
 0x15d   : > { %2418 = vmatmul.mubr.msk.f32.vlgmr.msra.gmra.mrb[0].mxu0 %vm530_vm0, %v2991_v35 }
 0x230   : > { %v2419_v37 = vpop.f32.mrb[0].mxu0 }
 0x231   : > { %v658_v38 = vadd.f32 %v2419_v37, %v2285_v36  ;;  %v652_v39 = vpop.f32.mrb[1].mxu0 }
 0x232   : > { %v653_v40 = vadd.f32 %v2285_v36, %v652_v39 }
 0x234   : > { %2424 = vmatprep.mubr.msk.f32.mxu1 %vm667_vm2, %v653_v40  ;;  %v2999_v41 = vpack.i.bf16 %v658_v38, %v653_v40 }
 0x236   : > { %2708 = vrot.lane.b32.xlu1 %v2999_v41, %s3314_s28  ;;  %2703 = vrot.lane.b32.xlu0 %v2999_v41, %s3315_s18  ;;  %s3319_s28 = smov 16   ;;  %s3333_s18 = smov 48  }
 0x23a   : > { %874 = vrot.lane.b32.xlu1 %v653_v40, %s3316_s20 }
 0x23e   : > { %876 = vrot.lane.b32.xlu1 %v658_v38, %s3316_s20  ;;  %s3334_s20 = smov 112  }
 0x2a8   : > { %v2709_v42 = vpop.permute.xlu1 %2708  ;;  %v2704_v43 = vpop.permute.xlu0 %2703 }
 0x2a9   : > { %v2711_v44 = vunpack.i.h.bf16 %v2709_v42  ;;  %v2710_v45 = vunpack.i.l.bf16 %v2709_v42  ;;  %v2706_v46 = vunpack.i.h.bf16 %v2704_v43  ;;  %v2705_v47 = vunpack.i.l.bf16 %v2704_v43 }
 0x2ab   : > { %v2565_v48 = vpack.c.bf16 %v2706_v46, %v2705_v47  ;;  %v2577_v49 = vpack.c.bf16 %v2711_v44, %v2710_v45  ;;  %v1089_v47 = vld [vmem:[%s3331_s6] sm:$0xff] }
 0x2ac   : > { %v875_v50 = vpop.permute.xlu1 %874 }
 0x2ad   : > { %2567 = vmatprep.subr.msk.bf16.mxu1 %vm2566_vm3, %v2565_v48 }
 0x2ae   : > { %2570 = vmatpush3.bf16.xpose.msk.msra.mxu1 %vm2566_vm3, %v2565_v48  ;;  %v1090_v48 = vld [vmem:[%s3331_s6 + $0x8] sm:$0xff] }
 0x2af   : > { %2579 = vmatprep.subr.msk.bf16.mxu1 %vm2566_vm3, %v2577_v49 }
 0x2b0   : > { %v877_v51 = vpop.permute.xlu1 %876 }
 0x2b5   : > { %2425 = vmatmul.mubr.msk.f32.vlgmr.msra.gmra.mrb[0].mxu1 %vm667_vm2, %v658_v38 }
 0x2b6   : > { %2582 = vmatpush3.bf16.xpose.msk.msra.mxu1 %vm2566_vm3, %v2577_v49  ;;  %2438 = vmatprep.mubr.msk.f32.mxu1 %vm667_vm2, %v875_v50  ;;  %v2589_v49 = vpack.c.bf16 %v1090_v48, %v1089_v47  ;;  %v1091_v50 = vld [vmem:[%s3331_s6 + $0x10] sm:$0xff]  ;;  %v1336_v48 = vld [vmem:[%s3307_s8 + $0x38] sm:$0xff] }
 0x2b7   : > { %v1335_v47 = vld [vmem:[%s3307_s8 + $0x30] sm:$0xff] }
 0x2bd   : > { %2439 = vmatmul.mubr.msk.f32.vlgmr.msra.gmra.mrb[2].mxu1 %vm667_vm2, %v877_v51  ;;  %v1092_v51 = vld [vmem:[%s3331_s6 + $0x18] sm:$0xff]  ;;  %s2832_s6 = smov 24  }
 0x388   : > { %v2426_v52 = vpop.f32.mrb[0].mxu1 }
 0x389   : > { %v752_v54 = vmul.f32 0.25, %v2426_v52  ;;  %v742_v55 = vpop.f32.mrb[1].mxu1  ;;  %v2593_v52 = vpack.c.bf16 %v1092_v51, %v1091_v50  ;;  %v1337_v50 = vld [vmem:[%s3307_s8 + $0x40] sm:$0xff]  ;;  %v1338_v51 = vld [vmem:[%s3307_s8 + $0x48] sm:$0xff] }
 0x38a   : > { %v751_v56 = vmul.f32 0.25, %v742_v55 }
 0x38b   : > { %v760_v57 = vadd.f32 %v2292_v53, %v752_v54 }
 0x38c   : > { %v759_v58 = vadd.f32 %v2292_v53, %v751_v56 }
 0x38d   : > { %v766_v59 = vsel %vm765_vm4, %v760_v57, -inf }
 0x38e   : > { %767 = vmax.xlane.f32.xlu1 %v766_v59  ;;  %v762_v60 = vsel %vm761_vm5, %v759_v58, -inf }
 0x38f   : > { %763 = vmax.xlane.f32.xlu0 %v762_v60 }
 0x390   : > { %v2440_v61 = vpop.f32.mrb[2].mxu1 }
 0x391   : > { %v956_v62 = vpop.f32.mrb[3].mxu1  ;;  %v966_v63 = vmul.f32 0.25, %v2440_v61  ;;  %v2303_v61 = vld [vmem:[%s3303_s4 + $0x7] ss:$0 sm:$0xff] }
 0x392   : > { %v965_v0 = vmul.f32 0.25, %v956_v62 }
 0x393   : > { %v968_v3 = vadd.f32 %v2292_v53, %v966_v63 }
 0x394   : > { %v967_v1 = vadd.f32 %v2292_v53, %v965_v0 }
 0x395   : > { %v972_v4 = vsel %vm765_vm4, %v968_v3, -inf }
 0x396   : > { %v969_v2 = vsel %vm761_vm5, %v967_v1, -inf }
 0x397   : > { %970 = vmax.xlane.f32.xlu0 %v969_v2 }
 0x39b   : > { %973 = vmax.xlane.f32.xlu0 %v972_v4 }
 0x41b   : > { %v768_v5 = vpop.xlane.xlu1 %767 }
 0x41c   : > { %v770_v6 = vsub.f32 %v760_v57, %v768_v5  ;;  %v764_v7 = vpop.xlane.xlu0 %763 }
 0x41d   : > { %v769_v8 = vsub.f32 %v759_v58, %v764_v7 }
 0x41e   : > { %v773_v9 = vmul.f32 1.442695, %v770_v6 }
 0x41f   : > { %v771_v10 = vmul.f32 1.442695, %v769_v8 }
 0x420   : > { %2727 = vpow2.f32 %v773_v9 }
 0x421   : > { %2729 = vpow2.f32 %v771_v10 }
 0x424   : > { %v971_v11 = vpop.xlane.xlu0 %970 }
 0x425   : > { %v975_v12 = vsub.f32 %v967_v1, %v971_v11 }
 0x427   : > { %v977_v13 = vmul.f32 1.442695, %v975_v12 }
 0x428   : > { %v974_v14 = vpop.xlane.xlu0 %973 }
 0x429   : > { %2731 = vpow2.f32 %v977_v13  ;;  %v976_v15 = vsub.f32 %v968_v3, %v974_v14 }
 0x42a   : > { %v2728_v16 = vpop.eup %2727 }
 0x42b   : > { %v2730_v17 = vpop.eup %2729  ;;  %v979_v18 = vmul.f32 1.442695, %v976_v15  ;;  %v778_v19 = vsel %vm765_vm4, %v2728_v16, 0.0  ;;  %v1222_v15 = vld [vmem:[%s3306_s7 + $0x8] sm:$0xff] }
 0x42c   : > { %779 = vadd.xlane.f32.xlu1 %v778_v19  ;;  %v775_v20 = vsel %vm761_vm5, %v2730_v17, 0.0 }
 0x42d   : > { %2733 = vpow2.f32 %v979_v18  ;;  %776 = vadd.xlane.f32.xlu0 %v775_v20  ;;  %v1224_v18 = vld [vmem:[%s3306_s7 + $0x18] sm:$0xff] }
 0x433   : > { %v2732_v21 = vpop.eup %2731 }
 0x434   : > { %v981_v22 = vsel %vm761_vm5, %v2732_v21, 0.0 }
 0x435   : > { %982 = vadd.xlane.f32.xlu0 %v981_v22 }
 0x437   : > { %v2734_v23 = vpop.eup %2733 }
 0x438   : > { %v984_v24 = vsel %vm765_vm4, %v2734_v23, 0.0 }
 0x439   : > { %985 = vadd.xlane.f32.xlu1 %v984_v24 }
 0x44a   : > { %2718 = vrot.lane.b32.xlu1 %v2999_v41, %s3317_s26  ;;  %s2830_s26 = smov 32  }
 0x44b   : > { %2713 = vrot.lane.b32.xlu0 %v2999_v41, %s3318_s27  ;;  %s3335_s27 = smov 16  }
 0x4b9   : > { %v780_v26 = vpop.xlane.xlu1 %779 }
 0x4ba   : > { %v777_v25 = vpop.xlane.xlu0 %776 }
 0x4bb   : > { %2735 = vrcp.f32 %v777_v25 }
 0x4bc   : > { %2737 = vrcp.f32 %v780_v26 }
 0x4c2   : > { %v983_v27 = vpop.xlane.xlu0 %982 }
 0x4c3   : > { %2739 = vrcp.f32 %v983_v27  ;;  %v2306_v27 = vld [vmem:[%s3303_s4 + $0x2] ss:$0 sm:$0xff] }
 0x4c5   : > { %v2736_v28 = vpop.eup %2735 }
 0x4c6   : > { %v986_v29 = vpop.xlane.xlu1 %985  ;;  %v2714_v30 = vpop.permute.xlu0 %2713  ;;  %v782_v31 = vmul.f32 %v2736_v28, %v2730_v17  ;;  %v1223_v17 = vld [vmem:[%s3306_s7 + $0x10] sm:$0xff] }
 0x4c7   : > { %2741 = vrcp.f32 %v986_v29  ;;  %v2716_v32 = vunpack.i.h.bf16 %v2714_v30  ;;  %v2715_v34 = vunpack.i.l.bf16 %v2714_v30  ;;  %v2738_v37 = vpop.eup %2737  ;;  %v2601_v19 = vpack.c.bf16 %v1224_v18, %v1223_v17  ;;  %v2307_v29 = vld [vmem:[%s3303_s4 + $0x3] ss:$0 sm:$0xff] }
 0x4c8   : > { %2431 = vmatprep.mubr.msk.f32.mxu0 %vm761_vm5, %v782_v31  ;;  %v784_v42 = vmul.f32 %v2738_v37, %v2728_v16 }
 0x4c9   : > { %v2571_v36 = vpack.c.bf16 %v2716_v32, %v2715_v34 }
 0x4ca   : > { %v2719_v38 = vpop.permute.xlu1 %2718 }
 0x4cb   : > { %v2721_v39 = vunpack.i.h.bf16 %v2719_v38  ;;  %v2720_v40 = vunpack.i.l.bf16 %v2719_v38  ;;  %2573 = vmatprep.subr.msk.bf16.mxu0 %vm2572_vm8, %v2571_v36  ;;  %v1329_v38 = vld [vmem:[%s3307_s8] sm:$0xff] }
 0x4cc   : > { %2576 = vmatpush3.bf16.msk.msra.mxu0 %vm2572_vm8, %v2571_v36 }
 0x4cd   : > { %v2740_v41 = vpop.eup %2739  ;;  %v2583_v43 = vpack.c.bf16 %v2721_v39, %v2720_v40  ;;  %v1330_v39 = vld [vmem:[%s3307_s8 + $0x8] sm:$0xff] }
 0x4ce   : > { %v988_v44 = vmul.f32 %v2740_v41, %v2732_v21  ;;  %v2605_v40 = vpack.c.bf16 %v1330_v39, %v1329_v38  ;;  %v1331_v41 = vld [vmem:[%s3307_s8 + $0x10] sm:$0xff] }
 0x4cf   : > { %2432 = vmatmul.mubr.msk.f32.vlgmr.msra.gmra.mrb[2].mxu0 %vm761_vm5, %v784_v42  ;;  %2585 = vmatprep.subr.msk.bf16.mxu0 %vm2572_vm8, %v2583_v43  ;;  %v1332_v42 = vld [vmem:[%s3307_s8 + $0x18] sm:$0xff] }
 0x4d0   : > { %2588 = vmatpush3.bf16.msk.msra.mxu0 %vm2572_vm8, %v2583_v43  ;;  %2445 = vmatprep.mubr.msk.f32.mxu0 %vm761_vm5, %v988_v44  ;;  %v2609_v43 = vpack.c.bf16 %v1332_v42, %v1331_v41  ;;  %v1333_v44 = vld [vmem:[%s3307_s8 + $0x20] sm:$0xff] }
 0x4d1   : > { %v2742_v45 = vpop.eup %2741  ;;  %2590 = vmatprep.subr.bf16.mxu0 %v2589_v49  ;;  %v1564_v41 = vld [vmem:[%s520_s5] sm:$0xff]  ;;  %s3332_s5 = smov 64  }
 0x4d2   : > { %v990_v46 = vmul.f32 %v2742_v45, %v2734_v23  ;;  %v1334_v45 = vld [vmem:[%s3307_s8 + $0x28] sm:$0xff]  ;;  %v1473_v42 = vld [vmem:[%s3308_s9] sm:$0xff] }
 0x4d4   : > { %2446 = vmatmul.mubr.msk.f32.vlgmr.msra.gmra.mrb[4].mxu0 %vm761_vm5, %v990_v46  ;;  %v2613_v46 = vpack.c.bf16 %v1334_v45, %v1333_v44  ;;  %v1475_v45 = vld [vmem:[%s3308_s9 + $0x10] sm:$0xff] }
 0x4d5   : > { %2592 = vmatpush3.bf16.msra.mxu0 %v2589_v49  ;;  %v2617_v49 = vpack.c.bf16 %v1336_v48, %v1335_v47  ;;  %v2827_v47 = vmov 0.0|0.0   ;;  %v2829_v48 = vmov 0.0  }
 0x4d6   : > { %2594 = vmatprep.subr.bf16.mxu0 %v2593_v52 }
 0x4d9   : > { %2596 = vmatpush3.bf16.msra.mxu0 %v2593_v52  ;;  %v1339_v52 = vld [vmem:[%s3307_s8 + $0x50] sm:$0xff] }
 0x4da   : > { %2606 = vmatprep.subr.bf16.mxu0 %v2605_v40 }
 0x5a2   : > { %v2433_v53 = vpop.f32.mrb[2].mxu0 }
 0x5a3   : > { %v865_v54 = vpop.f32.mrb[3].mxu0 }
 0x5a7   : > { %v2447_v55 = vpop.f32.mrb[4].mxu0 }
 0x5a8   : > { %v1070_v56 = vpop.f32.mrb[5].mxu0 }
 0x5a9   : > { %1081 = vrot.lane.b32.xlu1 %v1070_v56, %s3319_s28  ;;  %v1341_v56 = vld [vmem:[%s3307_s8 + $0x60] sm:$0xff] }
 0x5ad   : > { %1083 = vrot.lane.b32.xlu1 %v2447_v55, %s3319_s28  ;;  %s3337_s28 = smov 80  }
 0x61b   : > { %v1082_v57 = vpop.permute.xlu1 %1081 }
 0x61c   : > { %v1087_v58 = vsel %vm667_vm2, %v865_v54, %v1082_v57  ;;  %v1340_v54 = vld [vmem:[%s3307_s8 + $0x58] sm:$0xff]  ;;  %v1342_v57 = vld [vmem:[%s3307_s8 + $0x68] sm:$0xff] }
 0x61d   : > { %2456 = vmatprep.mubr.msk.f32.mxu0 %vm530_vm0, %v1087_v58  ;;  %v2625_v55 = vpack.c.bf16 %v1340_v54, %v1339_v52  ;;  %v2629_v58 = vpack.c.bf16 %v1342_v57, %v1341_v56  ;;  %v1467_v57 = vld [vmem:[%s516_s1] sm:$0xff]  ;;  %s2331_s1 = sshll.u32 %s2930_s17, 7  ;;  %s2141_s17 = scalar_lea.sflag [#allocation3], %s502_s22 }
 0x61f   : > { %v1084_v59 = vpop.permute.xlu1 %1083 }
 0x620   : > { %v1088_v60 = vsel %vm667_vm2, %v2433_v53, %v1084_v59  ;;  %v2621_v53 = vpack.c.bf16 %v1338_v51, %v1337_v50  ;;  %v1343_v59 = vld [vmem:[%s3307_s8 + $0x70] sm:$0xff] }
 0x621   : > { %2457 = vmatmul.mubr.msk.f32.vlgmr.msra.gmra.mrb[6].mxu0 %vm530_vm0, %v1088_v60  ;;  %v1344_v60 = vld [vmem:[%s3307_s8 + $0x78] sm:$0xff] }
 0x622   : > { %2608 = vmatpush3.bf16.msra.mxu0 %v2605_v40 }
 0x623   : > { %2610 = vmatprep.subr.bf16.mxu0 %v2609_v43 }
 0x626   : > { %2612 = vmatpush3.bf16.msra.mxu0 %v2609_v43  ;;  %v1474_v43 = vld [vmem:[%s3308_s9 + $0x8] sm:$0xff] }
 0x627   : > { %2614 = vmatprep.subr.bf16.mxu0 %v2613_v46  ;;  %v2638_v44 = vpack.c.bf16 %v1474_v43, %v1473_v42 }
 0x62a   : > { %2616 = vmatpush3.bf16.msra.mxu0 %v2613_v46  ;;  %v1476_v46 = vld [vmem:[%s3308_s9 + $0x18] sm:$0xff] }
 0x62b   : > { %2618 = vmatprep.subr.bf16.mxu0 %v2617_v49 }
 0x62e   : > { %2620 = vmatpush3.bf16.msra.mxu0 %v2617_v49  ;;  %v2641_v49 = vpack.c.bf16 %v1476_v46, %v1475_v45 }
 0x62f   : > { %2622 = vmatprep.subr.bf16.mxu0 %v2621_v53 }
 0x632   : > { %2624 = vmatpush3.bf16.msra.mxu0 %v2621_v53 }
 0x633   : > { %2626 = vmatprep.subr.bf16.mxu0 %v2625_v55 }
 0x636   : > { %2628 = vmatpush3.bf16.msra.mxu0 %v2625_v55 }
 0x637   : > { %2630 = vmatprep.subr.bf16.mxu0 %v2629_v58 }
 0x63a   : > { %2632 = vmatpush3.bf16.msra.mxu0 %v2629_v58  ;;  %v2312_v58 = vld [vmem:[%s3303_s4 + $0x4] ss:$0 sm:$0xff] }
 0x6f4   : > { %v2458_v62 = vpop.f32.mrb[6].mxu0 }
 0x6f5   : > { %v1176_v63 = vadd.f32 %v2458_v62, %v2303_v61  ;;  %v1170_v0 = vpop.f32.mrb[7].mxu0  ;;  %v2308_v62 = vld [vmem:[%s3303_s4 + $0x8] ss:$0 sm:$0xff] }
 0x6f6   : > { %v1171_v1 = vadd.f32 %v2303_v61, %v1170_v0  ;;  %v2633_v61 = vpack.c.bf16 %v1344_v60, %v1343_v59 }
 0x6f7   : > { %v1180_v2 = vadd.f32 %v1176_v63, %v2991_v35 }
 0x6f8   : > { %v1179_v3 = vadd.f32 %v1171_v1, %v2987_v33  ;;  %v1221_v33 = vld [vmem:[%s3306_s7] sm:$0xff]  ;;  %2634 = vmatprep.subr.bf16.mxu0 %v2633_v61 }
 0x6f9   : > { %v1186_v4 = vsel %vm534_vm1, %v1180_v2, 0.0  ;;  %v2597_v16 = vpack.c.bf16 %v1222_v15, %v1221_v33  ;;  %2636 = vmatpush3.bf16.msra.mxu0 %v2633_v61 }
 0x6fa   : > { %1187 = vadd.xlane.f32.xlu1 %v1186_v4  ;;  %v1183_v5 = vsel %vm530_vm0, %v1179_v3, 0.0  ;;  %2547 = vmatprep.subr.mxu0 %v2829_v48 }
 0x6fb   : > { %1184 = vadd.xlane.f32.xlu0 %v1183_v5  ;;  %2598 = vmatprep.subr.bf16.mxu1 %v2597_v16 }
 0x6fc   : > { %2600 = vmatpush3.bf16.msra.mxu1 %v2597_v16 }
 0x6fd   : > { %2602 = vmatprep.subr.bf16.mxu1 %v2601_v19 }
 0x700   : > { %2604 = vmatpush3.bf16.msra.mxu1 %v2601_v19  ;;  %v2311_v19 = vld [vmem:[%s3303_s4 + $0x9] ss:$0 sm:$0xff] }
 0x701   : > { %2637 = vmatprep.subr.bf16.mxu1 %v2827_v47 }
 0x787   : > { %v1188_v6 = vpop.xlane.xlu1 %1187 }
 0x788   : > { %v1190_v7 = vmul.f32 0.03125, %v1188_v6  ;;  %v1185_v8 = vpop.xlane.xlu0 %1184 }
 0x789   : > { %v1189_v9 = vmul.f32 0.03125, %v1185_v8 }
 0x78a   : > { %v1192_v10 = vsub.f32 %v1180_v2, %v1190_v7 }
 0x78b   : > { %v1191_v11 = vsub.f32 %v1179_v3, %v1189_v9 }
 0x78c   : > { %v1194_v14 = vmul.f32 %v1192_v10, %v1192_v10 }
 0x78d   : > { %v1193_v12 = vmul.f32 %v1191_v11, %v1191_v11 }
 0x78e   : > { %v1198_v35 = vsel %vm534_vm1, %v1194_v14, 0.0 }
 0x78f   : > { %v1195_v13 = vsel %vm530_vm0, %v1193_v12, 0.0 }
 0x790   : > { %1196 = vadd.xlane.f32.xlu0 %v1195_v13 }
 0x794   : > { %1199 = vadd.xlane.f32.xlu0 %v1198_v35 }
 0x81d   : > { %v1197_v20 = vpop.xlane.xlu0 %1196 }
 0x81e   : > { %v1201_v21 = vmul.f32 0.03125, %v1197_v20 }
 0x820   : > { %v1203_v22 = vadd.f32 1e-12, %v1201_v21 }
 0x821   : > { %v1200_v23 = vpop.xlane.xlu0 %1199 }
 0x822   : > { %2743 = vrsqrt.f32 %v1203_v22  ;;  %v1202_v24 = vmul.f32 0.03125, %v1200_v23 }
 0x824   : > { %v1204_v25 = vadd.f32 1e-12, %v1202_v24 }
 0x826   : > { %2745 = vrsqrt.f32 %v1204_v25 }
 0x82c   : > { %v2744_v26 = vpop.eup %2743 }
 0x82d   : > { %v1207_v28 = vmul.f32 %v2744_v26, %v1191_v11 }
 0x82f   : > { %v1213_v30 = vmul.f32 %v2306_v27, %v1207_v28  ;;  %v2826_v28 = vmov 0  }
 0x830   : > { %v2746_v31 = vpop.eup %2745  ;;  %2722 = vset.pattern.permute.xlu0 %v2826_v28  ;;  %v2321_v28 = vld [vmem:[%s3303_s4 + $0xb] ss:$0 sm:$0xff] }
 0x831   : > { %v1208_v32 = vmul.f32 %v2746_v31, %v1192_v10  ;;  %v3077_v34 = vadd.f32 %v2307_v29, %v1213_v30 }
 0x833   : > { %v1214_v36 = vmul.f32 %v2306_v27, %v1208_v32  ;;  %2467 = vmatprep.mubr.msk.f32.mxu1 %vm530_vm0, %v3077_v34 }
 0x835   : > { %v3081_v37 = vadd.f32 %v2307_v29, %v1214_v36 }
 0x837   : > { %2468 = vmatmul.mubr.msk.f32.vlgmr.msra.gmra.mrb[4].mxu1 %vm530_vm0, %v3081_v37 }
 0x838   : > { %2513 = vmatprep.mubr.msk.f32.mxu1 %vm2828_vm9, %v2829_v48  ;;  %2639 = vmatpush3.bf16.msra.mxu1 %v2638_v44 }
 0x839   : > { %2640 = vmatprep.subr.bf16.mxu1 %v2827_v47 }
 0x83c   : > { %2642 = vmatpush3.bf16.msra.mxu1 %v2641_v49 }
 0x83d   : > { %2516 = vmatprep.subr.mxu1 %v2829_v48 }
 0x90a   : > { %v2469_v63 = vpop.f32.mrb[4].mxu1 }
 0x90b   : > { %v1308_v0 = vadd.f32 %v2469_v63, %v2308_v62  ;;  %v1302_v1 = vpop.f32.mrb[5].mxu1  ;;  %v1469_v63 = vrot.slane %v1467_v57, 7 }
 0x90c   : > { %v1303_v2 = vadd.f32 %v2308_v62, %v1302_v1  ;;  %v2313_v62 = vld [vmem:[%s3303_s4 + $0x5] ss:$0 sm:$0xff]  ;;  %v1562_v1 = vlaneseq }
 0x90d   : > { %v1312_v3 = vmul.f32 %v1308_v0, %v1308_v0 }
 0x90e   : > { %v1311_v4 = vmul.f32 %v1303_v2, %v1303_v2 }
 0x90f   : > { %v1314_v5 = vmul.f32 %v1312_v3, %v1308_v0 }
 0x910   : > { %v1313_v6 = vmul.f32 %v1311_v4, %v1303_v2 }
 0x911   : > { %v1316_v7 = vmul.f32 0.044715, %v1314_v5 }
 0x912   : > { %v1315_v8 = vmul.f32 0.044715, %v1313_v6  ;;  %v1563_v6 = vand.u32 127, %v1562_v1 }
 0x913   : > { %v1318_v9 = vadd.f32 %v1316_v7, %v1308_v0 }
 0x914   : > { %v1317_v10 = vadd.f32 %v1315_v8, %v1303_v2 }
 0x915   : > { %v1320_v11 = vmul.f32 0.7978846, %v1318_v9 }
 0x916   : > { %v1319_v12 = vmul.f32 0.7978846, %v1317_v10 }
 0x917   : > { %2747 = vtanh.f32 %v1320_v11  ;;  %v1571_v11 = vld [vmem:[%s3309_s10] sm:$0x1f] }
 0x918   : > { %2749 = vtanh.f32 %v1319_v12 }
 0x921   : > { %v2748_v13 = vpop.eup %2747 }
 0x922   : > { %v2750_v14 = vpop.eup %2749  ;;  %v1324_v35 = vadd.f32 1.0, %v2748_v13 }
 0x923   : > { %v1323_v33 = vadd.f32 1.0, %v2750_v14  ;;  %v1653_v14 = vld [vmem:[%s3311_s12] sm:$0xff] }
 0x924   : > { %v1326_v15 = vmul.f32 0.5, %v1324_v35  ;;  %v2314_v35 = vld [vmem:[%s3303_s4 + $0xa] ss:$0 sm:$0xff] }
 0x925   : > { %v1325_v16 = vmul.f32 0.5, %v1323_v33  ;;  %v1649_v33 = vld [vmem:[%s3310_s11] sm:$0xff] }
 0x926   : > { %v1328_v18 = vmul.f32 %v1326_v15, %v1308_v0  ;;  %v1650_v15 = vld [vmem:[%s3310_s11 + $0x8] sm:$0xff] }
 0x927   : > { %v1327_v17 = vmul.f32 %v1325_v16, %v1303_v2 }
 0x929   : > { %2502 = vmatprep.mubr.f32.mxu0 %v1327_v17 }
 0x92a   : > { %2503 = vmatmul.mubr.f32.vlgmr.msra.gmra.mrb[8].mxu0 %v1328_v18 }
 0x92b   : > { %2549 = vmatprep.mubr.msk.f32.mxu0 %vm2828_vm9, %v2829_v48 }
 0x9fd   : > { %v2504_v20 = vpop.f32.mrb[8].mxu0 }
 0x9fe   : > { %v1422_v21 = vadd.f32 %v2504_v20, %v2311_v19  ;;  %v1416_v22 = vpop.f32.mrb[9].mxu0  ;;  %v1651_v20 = vld [vmem:[%s3310_s11 + $0x10] sm:$0xff] }
 0x9ff   : > { %v1417_v23 = vadd.f32 %v2311_v19, %v1416_v22  ;;  %v2644_v19 = vpack.c.bf16 %v1650_v15, %v1649_v33 }
 0xa00   : > { %v1426_v24 = vadd.f32 %v1422_v21, %v3081_v37  ;;  %v1652_v21 = vld [vmem:[%s3310_s11 + $0x18] sm:$0xff] }
 0xa01   : > { %v1425_v25 = vadd.f32 %v1417_v23, %v3077_v34 }
 0xa02   : > { %v1432_v26 = vsel %vm534_vm1, %v1426_v24, 0.0 }
 0xa03   : > { %1433 = vadd.xlane.f32.xlu1 %v1432_v26  ;;  %v1429_v27 = vsel %vm530_vm0, %v1425_v25, 0.0 }
 0xa04   : > { %1430 = vadd.xlane.f32.xlu0 %v1429_v27 }
 0xa90   : > { %v1434_v29 = vpop.xlane.xlu1 %1433 }
 0xa91   : > { %v1436_v30 = vmul.f32 0.03125, %v1434_v29  ;;  %v1431_v31 = vpop.xlane.xlu0 %1430 }
 0xa92   : > { %v1435_v32 = vmul.f32 0.03125, %v1431_v31 }
 0xa93   : > { %v1438_v36 = vsub.f32 %v1426_v24, %v1436_v30  ;;  %v2647_v24 = vpack.c.bf16 %v1652_v21, %v1651_v20 }
 0xa94   : > { %v1437_v38 = vsub.f32 %v1425_v25, %v1435_v32 }
 0xa95   : > { %v1440_v39 = vmul.f32 %v1438_v36, %v1438_v36 }
 0xa96   : > { %v1439_v40 = vmul.f32 %v1437_v38, %v1437_v38 }
 0xa97   : > { %v1444_v37 = vsel %vm534_vm1, %v1440_v39, 0.0 }
 0xa98   : > { %1445 = vadd.xlane.f32.xlu1 %v1444_v37  ;;  %v1441_v34 = vsel %vm530_vm0, %v1439_v40, 0.0 }
 0xa99   : > { %1442 = vadd.xlane.f32.xlu0 %v1441_v34 }
 0xaaf   : > { %1566 = vperm.xlu0 %2722, %v1564_v41  }
 0xb25   : > { %v1446_v50 = vpop.xlane.xlu1 %1445 }
 0xb26   : > { %v1448_v51 = vmul.f32 0.03125, %v1446_v50  ;;  %v1443_v52 = vpop.xlane.xlu0 %1442 }
 0xb27   : > { %v1447_v53 = vmul.f32 0.03125, %v1443_v52 }
 0xb28   : > { %v1450_v54 = vadd.f32 1e-12, %v1448_v51 }
 0xb29   : > { %v1449_v55 = vadd.f32 1e-12, %v1447_v53 }
 0xb2a   : > { %2751 = vrsqrt.f32 %v1450_v54 }
 0xb2b   : > { %2753 = vrsqrt.f32 %v1449_v55 }
 0xb2e   : > { %v1567_v8 = vpop.permute.xlu0 %1566 }
 0xb2f   : > { %vm1568_vm12 = vcmp.eq.s32.totalorder %v1563_v6, %v1567_v8 }
 0xb30   : > { %v2316_v13 = vsel %vm1568_vm12, 1.0, %v2829_v48 }
 0xb34   : > { %v2752_v56 = vpop.eup %2751 }
 0xb35   : > { %v2754_v59 = vpop.eup %2753  ;;  %v1454_v60 = vmul.f32 %v2752_v56, %v1438_v36 }
 0xb36   : > { %v1453_v61 = vmul.f32 %v2754_v59, %v1437_v38 }
 0xb37   : > { %v1460_v0 = vmul.f32 %v2312_v58, %v1454_v60 }
 0xb38   : > { %v1459_v2 = vmul.f32 %v2312_v58, %v1453_v61 }
 0xb39   : > { %v1466_v3 = vadd.f32 %v2313_v62, %v1460_v0 }
 0xb3a   : > { %v1465_v4 = vadd.f32 %v2313_v62, %v1459_v2 }
 0xb3b   : > { %v1472_v5 = vmul.f32 %v1469_v63, %v1466_v3 }
 0xb3c   : > { %v1471_v7 = vmul.f32 %v1469_v63, %v1465_v4 }
 0xb3d   : > { %v1486_v9 = vrot.slane %v1472_v5, 1 }
 0xb3e   : > { %v1485_v10 = vrot.slane %v1471_v7, 1 }
 0xb40   : > { %v1487_v12 = vsel %vm1484_vm10, %v1485_v10, %v1486_v9 }
 0xb41   : > { %2514 = vmatmul.mubr.msk.f32.vlgmr.msra.gmra.mrb[6].mxu1 %vm530_vm0, %v1487_v12 }
 0xb42   : > { %2517 = vmatpush3.msk.msra.mxu1 %vm1575_vm11, %v1571_v11  ;;  %2518 = vmatprep.mubr.msk.f32.mxu1 %vm2828_vm9, %v2829_v48 }
 0xb43   : > { %2521 = vmatprep.subr.mxu1 %v2829_v48 }
 0xb45   : > { %2519 = vmatmul.mubr.msk.f32.vlgmr.msra.gmra.mrb[8].mxu1 %vm1560_vm13, %v2316_v13 }
 0xb46   : > { %2523 = vmatprep.mubr.msk.f32.mxu1 %vm2828_vm9, %v2829_v48  ;;  %2522 = vmatpush3.msra.mxu1 %v1653_v14 }
 0xb47   : > { %2643 = vmatprep.subr.bf16.mxu1 %v2827_v47 }
 0xc14   : > { %v1556_v16 = vpop.f32.mrb[6].mxu1 }
 0xc15   : > { %v1557_v17 = vadd.f32 %v2314_v35, %v1556_v16  ;;  %v2515_v18 = vpop.f32.mrb[7].mxu1 }
 0xc17   : > { %1561 = vst.msk [vmem:[%s524_s21] sm:$0xff] %vm1560_vm13, %v1557_v17  ;;  %s3336_s21 = smov 96  }
 0xc18   : > { %v1645_v22 = vpop.f32.mrb[8].mxu1 }
 0xc19   : > { %v2520_v23 = vpop.f32.mrb[9].mxu1  ;;  %2524 = vmatmul.mubr.msk.f32.vlgmr.msra.gmra.mrb[10].mxu1 %vm1654_vm14, %v1645_v22 }
 0xc1a   : > { %2645 = vmatpush3.bf16.msra.mxu1 %v2644_v19  ;;  %2534 = vmatprep.mubr.msk.f32.mxu1 %vm2828_vm9, %v2829_v48 }
 0xc1b   : > { %2646 = vmatprep.subr.bf16.mxu1 %v2827_v47 }
 0xc1e   : > { %2648 = vmatpush3.bf16.msra.mxu1 %v2647_v24 }
 0xc1f   : > { %2537 = vmatprep.subr.mxu1 %v2829_v48 }
 0xc21   : > { %2535 = vmatmul.mubr.msk.f32.vlgmr.msra.gmra.mrb[12].mxu1 %vm530_vm0, %v1487_v12 }
 0xc22   : > { %2539 = vmatprep.mubr.msk.f32.mxu1 %vm2828_vm9, %v2829_v48 }
 0xcec   : > { %v1724_v25 = vpop.f32.mrb[10].mxu1 }
 0xced   : > { %v2525_v26 = vpop.f32.mrb[11].mxu1 }
 0xcf4   : > { %v1794_v27 = vpop.f32.mrb[12].mxu1 }
 0xcf5   : > { %v1795_v29 = vadd.f32 %v1794_v27, %v1724_v25  ;;  %v2536_v30 = vpop.f32.mrb[13].mxu1 }
 0xcf7   : > { %v1803_v31 = vadd.f32 %v2321_v28, %v1795_v29 }
 0xcf9   : > { %1805 = vrot.lane.b32.xlu1 %v1803_v31, %s3332_s5  ;;  %s504_s5 = scalar_lea.vmem [#allocation2], %s2277_s0 }
 0xcfd   : > { %1884 = vrot.lane.b32.xlu1 %v1803_v31, %s3333_s18  ;;  %s2157_s18 = sshll.u32 %s504_s5, 4  ;;  %s3258_s18 = int_to_ptr.vmem [resolvable:$true] %s2157_s18 }
 0xd01   : > { %1882 = vrot.lane.b32.xlu1 %v1803_v31, %s3334_s20 }
 0xd05   : > { %1963 = vrot.lane.b32.xlu1 %v1803_v31, %s2830_s26 }
 0xd09   : > { %2042 = vrot.lane.b32.xlu1 %v1803_v31, %s3335_s27 }
 0xd0d   : > { %1961 = vrot.lane.b32.xlu1 %v1803_v31, %s3336_s21  ;;  %s2755_s21 = scalar_lea.vmem %s3258_s18, 128 }
 0xd0e   : > { %p2756_p11 = scmp.ne.s32.totalorder %s3258_s18, %s2755_s21 }
 0xd10   : > { %p2757_p12 = pnand %p2756_p11, %p2947_p5 }
 0xd11   : > { %2040 = vrot.lane.b32.xlu1 %v1803_v31, %s3337_s28  ;;  %s2833_s28 = smov [#allocation2]  }
 0xd12   : > { %p2758_p13 = pneg %p2757_p12 }
 0xd6b   : > { %v1806_v32 = vpop.permute.xlu1 %1805 }
 0xd6c   : > { %2538 = vmatpush3.xpose.msk.msra.mxu1 %vm667_vm2, %v1806_v32 }
 0xd6d   : > { %2542 = vmatprep.subr.mxu1 %v2829_v48 }
 0xd6f   : > { %2540 = vmatmul.mubr.msk.f32.vlgmr.msra.gmra.mrb[14].mxu1 %vm667_vm2, %v1803_v31  ;;  %v1885_v36 = vpop.permute.xlu1 %1884 }
 0xd70   : > { %2543 = vmatpush3.xpose.msk.msra.mxu1 %vm667_vm2, %v1885_v36  ;;  %2544 = vmatprep.mubr.msk.f32.mxu1 %vm2828_vm9, %v2829_v48 }
 0xd71   : > { %2552 = vmatprep.subr.mxu1 %v2829_v48 }
 0xd73   : > { %v1883_v38 = vpop.permute.xlu1 %1882 }
 0xd74   : > { %2545 = vmatmul.mubr.msk.f32.vlgmr.msra.gmra.mrb[16].mxu1 %vm667_vm2, %v1883_v38 }
 0xd75   : > { %2554 = vmatprep.mubr.msk.f32.mxu1 %vm2828_vm9, %v2829_v48 }
 0xd77   : > { %v1964_v39 = vpop.permute.xlu1 %1963 }
 0xd78   : > { %2548 = vmatpush3.xpose.msk.msra.mxu0 %vm667_vm2, %v1964_v39 }
 0xd7b   : > { %v2043_v40 = vpop.permute.xlu1 %2042 }
 0xd7c   : > { %2553 = vmatpush3.xpose.msk.msra.mxu1 %vm667_vm2, %v2043_v40 }
 0xd7f   : > { %v1962_v37 = vpop.permute.xlu1 %1961 }
 0xd80   : > { %2550 = vmatmul.mubr.msk.f32.vlgmr.msra.gmra.mrb[10].mxu0 %vm667_vm2, %v1962_v37 }
 0xd83   : > { %v2041_v34 = vpop.permute.xlu1 %2040 }
 0xd84   : > { %2555 = vmatmul.mubr.msk.f32.vlgmr.msra.gmra.mrb[18].mxu1 %vm667_vm2, %v2041_v34 }
 0xe42   : > { %v1877_v41 = vpop.f32.mrb[14].mxu1 }
 0xe43   : > { %v2541_v42 = vpop.f32.mrb[15].mxu1  ;;  %v1881_v53 = vmul.f32 0.25, %v1877_v41 }
 0xe47   : > { %v1956_v43 = vpop.f32.mrb[16].mxu1 }
 0xe48   : > { %v1960_v44 = vmul.f32 0.25, %v1956_v43  ;;  %v2546_v45 = vpop.f32.mrb[17].mxu1 }
 0xe4a   : > { %2120 = vrot.lane.b32.xlu1 %v1960_v44, %s2831_s25  ;;  %s2759_s25 = sshll.u32 %s2833_s28, 4  ;;  %s2760_s25 = int_to_ptr.vmem [resolvable:$false] %s2759_s25 }
 0xe4b   : > { %p2762_p0 = scmp.lt.s32.totalorder %s3258_s18, %s2760_s25 }
 0xe53   : > { %v2035_v46 = vpop.f32.mrb[10].mxu0 }
 0xe54   : > { %v2039_v47 = vmul.f32 0.25, %v2035_v46  ;;  %v2551_v48 = vpop.f32.mrb[11].mxu0 }
 0xe56   : > { %2124 = vrot.lane.b32.xlu0 %v2039_v47, %s3335_s27  ;;  %s3256_s27 = scalar_lea.hbm %s3313_s14, %s2331_s1 }
 0xe57   : > { %v2114_v49 = vpop.f32.mrb[18].mxu1 }
 0xe58   : > { %v2118_v50 = vmul.f32 0.25, %v2114_v49  ;;  %v2556_v51 = vpop.f32.mrb[19].mxu1 }
 0xe5a   : > { %2128 = vrot.lane.b32.xlu1 %v2118_v50, %s2832_s6  ;;  %s2761_s6 = scalar_lea.vmem %s2760_s25, 256 }
 0xe5b   : > { %p2763_p1 = scmp.lt.s32.totalorder %s2761_s6, %s2755_s21 }
 0xe5d   : > { %p2764_p2 = por %p2763_p1, %p2762_p0 }
 0xe5f   : > { %p2765_p3 = pnand %p2764_p2, %p2758_p13 }
 0xebc   : > { %v2121_v52 = vpop.permute.xlu1 %2120 }
 0xebd   : > { %v2131_v55 = vsel %vm1654_vm14, %v1881_v53, %v2121_v52 }
 0xec8   : > { %v2125_v54 = vpop.permute.xlu0 %2124 }
 0xec9   : > { %v2132_v56 = vsel %vm667_vm2, %v2131_v55, %v2125_v54 }
 0xecc   : > { %v2129_v57 = vpop.permute.xlu1 %2128 }
 0xecd   : > { %v2134_v58 = vsel %vm2133_vm15, %v2132_v56, %v2129_v57 }
 0xece   : > { %2135 = vst.msk [vmem:[%s504_s5] sm:$0xff] %vm530_vm0, %v2134_v58 }
 0xecf   : > { %2768 = shalt.err (!%p2765_p3)
}
 0xed0   : > { %s2769_s22 = scalar_lea.hbm %s3256_s27, 128  ;;  %s2773_s5 = scalar_lea.hbm %s3313_s14, 256 }
 0xed1   : > { %p2770_p4 = scmp.ne.s32.totalorder %s3256_s27, %s2769_s22  ;;  %p2774_p9 = scmp.lt.u32.totalorder %s3256_s27, %s3313_s14 }
 0xed2   : > { %p2775_p10 = scmp.lt.u32.totalorder %s2773_s5, %s2769_s22  ;;  %p2777_p12 = scmp.lt.u32.totalorder %s2769_s22, %s3256_s27 }
 0xed3   : > { %p2771_p7 = pnand %p2770_p4, %p2947_p5 }
 0xed4   : > { %p2776_p11 = por %p2775_p10, %p2774_p9 }
 0xed5   : > { %p2772_p8 = pneg %p2771_p7 }
 0xed6   : > { %p2778_p13 = por %p2777_p12, %p2776_p11 }
 0xed8   : > { %p2779_p0 = pnand %p2778_p13, %p2772_p8 }
 0xeda   : > { %2782 = shalt.err (!%p2779_p0)
}
 0xedb   : > { %2649 = dma.vmem_to_hbm [thread:$0]  (%p2947_p5), %s3258_s18, 128, %s3256_s27, %s2141_s17  }
 0xedc PF: > { %p2655_p1 = scmp.ge.s32.totalorder %s2817_s16, 2  ;;  %s2176_s21 = sand.u32 1, %s2805_s29  }
 0xedd   : > { %s2177_s28 = scalar_lea.sflag [#allocation3], %s2176_s21 }
 0xede   : > { %p2652_p2 = pnand %p2655_p1, %p2951_p6 }
 0xee0   : > { %2800 = dma.done.wait (!%p2652_p2), %s2177_s28, 128  }
 0xee1   : > { %2802 = vsyncadd (!%p2652_p2), %s2177_s28, 4294967168  ;;  %s3338_s25 = sld [smem:[#allocation5_spill]]  ;;  %p25_p3 = scmp.ge.s32.totalorder %s2934_s19, 4  }
 0xee2   : > { %s3339_s29 = smov %s2809_s30  ;;  %s3340_s30 = smov %s2813_s15 }
 0xee3   : > { %s3342_s16 = smov %s2934_s19  ;;  %27 = sbr.rel (!%p25_p3) target bundleno = 8 (0x8), region = 128 }
 0xee7   : > { %s3341_s15 = smov %s3338_s25 }
 0xeea   :  { %2182 = vsyncpa [#allocation3], 1 }
 0xeeb   :  { %2184 = vsyncpa [#allocation3 + $0x1], 1 }

</bundles_post_ra>
